<compile_context>
chip_gen: v7x
topology: tpu7x:2x2x1
jax: 0.10.0
libtpu: 0.0.40
codegen_flags: <defaults>
</compile_context>

<pallas_src>
import functools

import jax
import jax.numpy as jnp
from jax import lax
from jax.experimental import pallas as pl
from jax.experimental.pallas import tpu as pltpu


def _round_up(x, m):
    return (x + m - 1) // m * m


def _pick_divisor_tile(dim, cap, step):
    """Largest multiple of `step` that is <= cap and divides `dim`, else None."""
    t = (min(cap, dim) // step) * step
    while t >= step:
        if dim % t == 0:
            return t
        t -= step
    return None


# --------------------------------------------------------------------------
# Kernel 1: transposed, lane-dense tiled GEMM + bias + LeakyReLU
#   out^T (cout, M) = W^T (cout, K) @ patches^T (K, M)
# --------------------------------------------------------------------------
def _gemm_T_kernel(w_ref, p_ref, b_ref, o_ref, acc_ref, *, negative_slope,
                   apply_act):
    k = pl.program_id(2)

    @pl.when(k == 0)
    def _init():
        acc_ref[...] = jnp.zeros_like(acc_ref)

    acc_ref[...] += jnp.dot(w_ref[...], p_ref[...],
                            preferred_element_type=jnp.float32)

    @pl.when(k == pl.num_programs(2) - 1)
    def _finalize():
        acc = acc_ref[...] + b_ref[...]            # (tn, tm) + (tn, 1)
        if apply_act:
            acc = jnp.where(acc >= 0.0, acc, negative_slope * acc)
        o_ref[...] = acc.astype(o_ref.dtype)


def conv_gemm_T(wT, pT, bcol, *, negative_slope=0.01, apply_act=True,
                out_dtype=jnp.bfloat16):
    """(cout,K)bf16 @ (K,M)bf16 + bias, LeakyReLU, f32 accumulation, bf16 out."""
    N, K = wT.shape
    K2, M = pT.shape
    assert K == K2

    # cout on the output sublane axis (full dim when small -> no padding).
    tn = N if N <= 256 else (_pick_divisor_tile(N, 256, 8) or N)

    # M on the output lane axis: full-dim block when small, else 128-dense tiles.
    if M <= 512:
        tm, m_pad = M, 0
    else:
        t = _pick_divisor_tile(M, 512, 128)
        if t is None:                     # rare fallback: pad M up to 128-mult
            tm = 128
            m_pad = _round_up(M, 128) - M
        else:
            tm, m_pad = t, 0
    Mp = M + m_pad

    # K reduction axis.
    tk = K if K <= 2048 else (_pick_divisor_tile(K, 2048, 128) or K)

    # Give the second TensorCore (v7x) work if the parallel sub-grid is 1x1.
    if (N // tn) * (Mp // tm) < 2:
        half = tm // 2
        if half >= 128 and half % 128 == 0 and Mp % half == 0:
            tm = half

    if m_pad:
        pT = jnp.pad(pT, ((0, 0), (0, m_pad)))

    k_steps = K // tk
    grid = (N // tn, Mp // tm, k_steps)

    if k_steps >= 4:
        # Deep-K layers: triple-buffer the streamed operands over the reduction.
        w_spec = pl.BlockSpec((tn, tk), lambda n, m, k: (n, k),
                              pipeline_mode=pl.Buffered(3))
        p_spec = pl.BlockSpec((tk, tm), lambda n, m, k: (k, m),
                              pipeline_mode=pl.Buffered(3))
        in_bufs = 3
    else:
        w_spec = pl.BlockSpec((tn, tk), lambda n, m, k: (n, k))
        p_spec = pl.BlockSpec((tk, tm), lambda n, m, k: (k, m))
        in_bufs = 2

    out_isize = 2 if out_dtype in (jnp.bfloat16, jnp.float16) else 4
    need = (in_bufs * (tn * tk + tk * tm) * 2     # bf16 W^T / patches^T blocks
            + 2 * tn * 4                          # bias column
            + 2 * tn * tm * out_isize             # output block
            + tn * tm * 4)                        # f32 accumulator
    vmem_limit = int(min(30 * 1024 * 1024, max(2 * need, 4 * 1024 * 1024)))
    cost = pl.CostEstimate(
        flops=2 * N * Mp * K, transcendentals=0,
        bytes_accessed=N * K * 2 + K * Mp * 2 + N * 4 + N * Mp * out_isize)

    kernel = functools.partial(_gemm_T_kernel, negative_slope=negative_slope,
                               apply_act=apply_act)

    out = pl.pallas_call(
        kernel,
        out_shape=jax.ShapeDtypeStruct((N, Mp), out_dtype),
        grid=grid,
        in_specs=[w_spec, p_spec,
                  pl.BlockSpec((tn, 1), lambda n, m, k: (n, 0))],
        out_specs=pl.BlockSpec((tn, tm), lambda n, m, k: (n, m)),
        scratch_shapes=[pltpu.VMEM((tn, tm), jnp.float32)],
        compiler_params=pltpu.CompilerParams(
            dimension_semantics=("parallel", "parallel", "arbitrary"),
            vmem_limit_bytes=vmem_limit),
        cost_estimate=cost,
    )(wT, pT, bcol)

    return out if m_pad == 0 else out[:, :M]


# --------------------------------------------------------------------------
# Kernel 2: fused heads — conv1 (3x3/s1/p1, cout=1) + conv2 (s x s, cout=N2).
# Reads the (padded) shared activation once; conv1's im2col is done in-kernel
# via shifted VMEM windows (VPU mul + lane reduce), conv2 via tiny per-tap dots.
# --------------------------------------------------------------------------
def _head_kernel(hp_ref, w1_ref, w2_ref, osrc_ref, ocls_ref, *, s):
    B = osrc_ref.shape[0]

    acc1 = jnp.zeros((B, s, s), jnp.float32)
    h_center = None
    for t in range(9):
        i, j = t // 3, t % 3
        win = hp_ref[:, i:i + s, j:j + s, :].astype(jnp.float32)   # (B,s,s,C)
        if t == 4:                                                 # i == j == 1
            h_center = win                                         # unpadded h
        acc1 = acc1 + jnp.sum(win * w1_ref[t], axis=-1)
    osrc_ref[...] = acc1

    n2 = ocls_ref.shape[-1]
    acc2 = jnp.zeros((B, n2), jnp.float32)
    for p in range(s * s):
        y, x = p // s, p % s
        hb = h_center[:, y, x, :]                                  # (B, C)
        acc2 = acc2 + jnp.dot(hb, w2_ref[p],
                              preferred_element_type=jnp.float32)
    ocls_ref[...] = acc2


def fused_heads(hpad_nhwc, w1taps, w2taps):
    B, sp2, _, C = hpad_nhwc.shape
    s = sp2 - 2
    N2 = w2taps.shape[-1]

    need = 2 * (hpad_nhwc.size * 2 + w1taps.size * 4 + w2taps.size * 4
                + B * s * s * 4 + B * N2 * 4)
    vmem_limit = int(min(30 * 1024 * 1024, max(need, 4 * 1024 * 1024)))

    kernel = functools.partial(_head_kernel, s=s)
    out_src, out_cls = pl.pallas_call(
        kernel,
        out_shape=(jax.ShapeDtypeStruct((B, s, s), jnp.float32),
                   jax.ShapeDtypeStruct((B, N2), jnp.float32)),
        grid=(1,),
        in_specs=[
            pl.BlockSpec((B, s + 2, s + 2, C), lambda i: (0, 0, 0, 0)),
            pl.BlockSpec((9, C), lambda i: (0, 0)),
            pl.BlockSpec((s * s, C, N2), lambda i: (0, 0, 0)),
        ],
        out_specs=(
            pl.BlockSpec((B, s, s), lambda i: (0, 0, 0)),
            pl.BlockSpec((B, N2), lambda i: (0, 0)),
        ),
        compiler_params=pltpu.CompilerParams(
            dimension_semantics=("arbitrary",),
            vmem_limit_bytes=vmem_limit),
    )(hpad_nhwc, w1taps, w2taps)
    return out_src, out_cls


# --------------------------------------------------------------------------
# im2col in transposed (K, M) form on channels-first (C, B, H, W) activations.
# --------------------------------------------------------------------------
def _im2col_T(x_cbhw, ksz, stride, pad):
    C, B, H, W = x_cbhw.shape
    if pad:
        x_cbhw = jnp.pad(x_cbhw, ((0, 0), (0, 0), (pad, pad), (pad, pad)))
    OH = (H + 2 * pad - ksz) // stride + 1
    OW = (W + 2 * pad - ksz) // stride + 1
    taps = []
    for i in range(ksz):
        for j in range(ksz):
            taps.append(
                x_cbhw[:, :, i:i + stride * OH:stride, j:j + stride * OW:stride])
    pT = jnp.stack(taps, axis=0)                     # (k*k, C, B, OH, OW)
    return pT.reshape(ksz * ksz * C, B * OH * OW), B, OH, OW
# TODO(synk): replace this XLA window extraction with in-kernel window DMA
# (memory_space=pl.ANY input + strided loads per output-column tile) to remove
# the k*k-inflated patch write+read from HBM.


def conv_layer(h_cbhw, layer):
    """One main conv layer: 4x4 / s2 / p1 + bias + LeakyReLU, bf16 in/out."""
    pT, B, OH, OW = _im2col_T(h_cbhw, layer["k"], layer["stride"], layer["pad"])
    out = conv_gemm_T(layer["wT"], pT, layer["bcol"],
                      negative_slope=0.01, apply_act=True,
                      out_dtype=jnp.bfloat16)        # (cout, B*OH*OW)
    return out.reshape(layer["cout"], B, OH, OW)


# --------------------------------------------------------------------------
# Parameter init (deterministic, synthetic — mirrors nn.Conv2d shapes).
# Weight reshapes / casts are hoisted here (once, not per forward).
# --------------------------------------------------------------------------
def _make_conv_layer(key, cin, cout, ksz, *, stride, pad, with_bias):
    kw_, kb_ = jax.random.split(key)
    w = (jax.random.normal(kw_, (cout, cin, ksz, ksz), jnp.float32)
         * 0.05).astype(jnp.bfloat16)
    bias = (jax.random.normal(kb_, (cout,), jnp.float32) * 0.05
            if with_bias else jnp.zeros((cout,), jnp.float32))
    # OIHW -> (O, kh, kw, I) -> (cout, kh*kw*cin); K index = (i*kw + j)*cin + c,
    # matching the tap-major / channel-minor order produced by _im2col_T.
    wT = jnp.transpose(w, (0, 2, 3, 1)).reshape(cout, ksz * ksz * cin)
    return dict(w_oihw=w, wT=wT, bias=bias, bcol=bias.reshape(cout, 1),
                cin=cin, cout=cout, k=ksz, stride=stride, pad=pad)


def init_discriminator(key, image_size=16, conv_dim=8, c_dim=5, repeat_num=2):
    assert image_size % (2 ** repeat_num) == 0, \
        "image_size must be divisible by 2**repeat_num"
    layers = []
    key, k0 = jax.random.split(key)
    layers.append(_make_conv_layer(k0, 3, conv_dim, 4, stride=2, pad=1,
                                   with_bias=True))
    curr = conv_dim
    for _ in range(1, repeat_num):
        key, k = jax.random.split(key)
        layers.append(_make_conv_layer(k, curr, curr * 2, 4, stride=2, pad=1,
                                       with_bias=True))
        curr *= 2
    s = image_size // (2 ** repeat_num)
    key, k1, k2 = jax.random.split(key, 3)
    w1 = (jax.random.normal(k1, (1, curr, 3, 3), jnp.float32)
          * 0.05).astype(jnp.bfloat16)
    w2 = (jax.random.normal(k2, (c_dim + 3, curr, s, s), jnp.float32)
          * 0.05).astype(jnp.bfloat16)
    # conv1 taps: (9, C) f32; row t = i*3+j holds w1[0, :, i, j].
    conv1_taps = jnp.transpose(w1[0].astype(jnp.float32), (1, 2, 0)).reshape(
        9, curr)
    # conv2 taps: (s*s, C, c_dim+3) f32; slab p = i*s+j holds w2[:, :, i, j]^T.
    conv2_taps = jnp.transpose(w2.astype(jnp.float32), (2, 3, 1, 0)).reshape(
        s * s, curr, c_dim + 3)
    return {"main": layers,
            "conv1_oihw": w1, "conv1_taps": conv1_taps,
            "conv2_oihw": w2, "conv2_taps": conv2_taps}


# --------------------------------------------------------------------------
# Forward pass (matches PyTorch Discriminator.forward semantics)
# --------------------------------------------------------------------------
def discriminator_forward(params, x_nchw):
    # NCHW f32 -> channels-first-flat bf16 (C, B, H, W)
    h = jnp.transpose(x_nchw, (1, 0, 2, 3)).astype(jnp.bfloat16)
    for layer in params["main"]:
        h = conv_layer(h, layer)                   # 4x4 / s2 / p1 + LeakyReLU

    C, B, s, _ = h.shape
    h_nhwc = jnp.transpose(h, (1, 2, 3, 0))        # tiny (B, s, s, C)
    hpad = jnp.pad(h_nhwc, ((0, 0), (1, 1), (1, 1), (0, 0)))
    out_src, out_cls = fused_heads(hpad, params["conv1_taps"],
                                   params["conv2_taps"])
    return out_src.reshape(B, 1, s, s), out_cls    # (B,1,s,s), (B, c_dim+3)


# --------------------------------------------------------------------------
# Pure-XLA reference (same bf16-rounded weights) for a numerical sanity check.
# --------------------------------------------------------------------------
def _reference_forward(params, x_nchw):
    dn = ("NCHW", "OIHW", "NCHW")
    h = x_nchw.astype(jnp.bfloat16).astype(jnp.float32)
    for layer in params["main"]:
        w = layer["w_oihw"].astype(jnp.float32)
        h = lax.conv_general_dilated(h, w, (layer["stride"],) * 2,
                                     ((layer["pad"], layer["pad"]),) * 2,
                                     dimension_numbers=dn)
        h = h + layer["bias"].reshape(1, -1, 1, 1)
        h = jnp.where(h >= 0.0, h, 0.01 * h)
    w1 = params["conv1_oihw"].astype(jnp.float32)
    out_src = lax.conv_general_dilated(h, w1, (1, 1), ((1, 1), (1, 1)),
                                       dimension_numbers=dn)
    w2 = params["conv2_oihw"].astype(jnp.float32)
    out_cls = lax.conv_general_dilated(h, w2, (1, 1), "VALID",
                                       dimension_numbers=dn)
    return out_src, out_cls.reshape(out_cls.shape[0], out_cls.shape[1])


if __name__ == "__main__":
    # Small configuration consistent with the module:
    #   image_size=16, conv_dim=8, c_dim=5, repeat_num=2, batch=2
    IMAGE_SIZE, CONV_DIM, C_DIM, REPEAT_NUM, BATCH = 16, 8, 5, 2, 2

    root = jax.random.PRNGKey(0)
    kx, kp = jax.random.split(root)
    x = jax.random.normal(kx, (BATCH, 3, IMAGE_SIZE, IMAGE_SIZE), jnp.float32)
    params = init_discriminator(kp, IMAGE_SIZE, CONV_DIM, C_DIM, REPEAT_NUM)

    # Close over params (keeps layer metadata static under jit).
    fwd = jax.jit(functools.partial(discriminator_forward, params))
    out_src, out_cls = fwd(x)
    jax.block_until_ready((out_src, out_cls))

    s = IMAGE_SIZE // (2 ** REPEAT_NUM)
    assert out_src.shape == (BATCH, 1, s, s), out_src.shape
    assert out_cls.shape == (BATCH, C_DIM + 3), out_cls.shape

    # Numerical check vs. an XLA conv reference built from the same bf16-rounded
    # weights (differences only from bf16 storage of intermediate activations).
    ref_src, ref_cls = jax.jit(functools.partial(_reference_forward, params))(x)
    assert bool(jnp.allclose(out_src, ref_src, atol=3e-2, rtol=3e-2))
    assert bool(jnp.allclose(out_cls, ref_cls, atol=3e-2, rtol=3e-2))

    print("KERNEL_OK")
</pallas_src>

<mosaic_0001>
module attributes {stable_mosaic.version = 11 : i64} {
  func.func @_gemm_T_kernel(%arg0: i32, %arg1: i32, %arg2: i32, %arg3: memref<8x48xbf16, #tpu.memory_space<vmem>>, %arg4: memref<48x128xbf16, #tpu.memory_space<vmem>>, %arg5: memref<8x1xf32, #tpu.memory_space<vmem>>, %arg6: memref<8x128xbf16, #tpu.memory_space<vmem>>, %arg7: memref<8x128xf32, #tpu.memory_space<vmem>>) attributes {dimension_semantics = [#tpu.dimension_semantics<parallel>, #tpu.dimension_semantics<parallel>, #tpu.dimension_semantics<arbitrary>], iteration_bounds = array<i64: 1, 1, 1>, scalar_prefetch = 0 : i64, scratch_operands = 1 : i64, tpu.core_type = #tpu.core_type<tc>, window_params = [{transform_indices = @transform_0, window_bounds = array<i64: 8, 48>}, {transform_indices = @transform_1, window_bounds = array<i64: 48, 128>}, {transform_indices = @transform_2, window_bounds = array<i64: 8, 1>}, {transform_indices = @transform_3, window_bounds = array<i64: 8, 128>}]} {
    %c0_i32 = arith.constant 0 : i32
    %0 = arith.cmpi eq, %arg2, %c0_i32 : i32
    %1 = arith.extui %0 : i1 to i32
    %c0_i32_0 = arith.constant 0 : i32
    %2 = arith.cmpi ne, %1, %c0_i32_0 : i32
    scf.if %2 {
      %cst_10 = arith.constant 0.000000e+00 : f32
      %12 = vector.broadcast %cst_10 : f32 to vector<8x128xf32>
      %c0_11 = arith.constant 0 : index
      %c0_12 = arith.constant 0 : index
      %13 = vector.load %arg7[%c0_11, %c0_12] : memref<8x128xf32, #tpu.memory_space<vmem>>, vector<8x128xf32>
      tpu.vector_store %arg7[%c0_11, %c0_12], %12 {strides = array<i32>} : memref<8x128xf32, #tpu.memory_space<vmem>>, vector<8x128xf32>,
    } else {
    }
    %c0 = arith.constant 0 : index
    %c0_1 = arith.constant 0 : index
    %3 = vector.load %arg7[%c0, %c0_1] : memref<8x128xf32, #tpu.memory_space<vmem>>, vector<8x128xf32>
    %c0_2 = arith.constant 0 : index
    %c0_3 = arith.constant 0 : index
    %4 = vector.load %arg3[%c0_2, %c0_3] : memref<8x48xbf16, #tpu.memory_space<vmem>>, vector<8x48xbf16>
    %c0_4 = arith.constant 0 : index
    %c0_5 = arith.constant 0 : index
    %5 = vector.load %arg4[%c0_4, %c0_5] : memref<48x128xbf16, #tpu.memory_space<vmem>>, vector<48x128xbf16>
    %cst = arith.constant dense<0.000000e+00> : vector<8x128xf32>
    %6 = tpu.matmul %4, %5, %cst {dimension_numbers = #tpu.dot_dimension_numbers<[1], [0], [0], [1], [0, 0, 1, 1], [], []>} : vector<8x48xbf16>, vector<48x128xbf16>, vector<8x128xf32> -> vector<8x128xf32>
    %7 = arith.addf %3, %6 : vector<8x128xf32>
    %c0_6 = arith.constant 0 : index
    %c0_7 = arith.constant 0 : index
    %8 = vector.load %arg7[%c0_6, %c0_7] : memref<8x128xf32, #tpu.memory_space<vmem>>, vector<8x128xf32>
    tpu.vector_store %arg7[%c0_6, %c0_7], %7 {strides = array<i32>} : memref<8x128xf32, #tpu.memory_space<vmem>>, vector<8x128xf32>,
    %c0_i32_8 = arith.constant 0 : i32
    %9 = arith.cmpi eq, %arg2, %c0_i32_8 : i32
    %10 = arith.extui %9 : i1 to i32
    %c0_i32_9 = arith.constant 0 : i32
    %11 = arith.cmpi ne, %10, %c0_i32_9 : i32
    scf.if %11 {
      %c0_10 = arith.constant 0 : index
      %c0_11 = arith.constant 0 : index
      %12 = vector.load %arg7[%c0_10, %c0_11] : memref<8x128xf32, #tpu.memory_space<vmem>>, vector<8x128xf32>
      %c0_12 = arith.constant 0 : index
      %c0_13 = arith.constant 0 : index
      %13 = vector.load %arg5[%c0_12, %c0_13] : memref<8x1xf32, #tpu.memory_space<vmem>>, vector<8x1xf32>
      %14 = vector.broadcast %13 : vector<8x1xf32> to vector<8x128xf32>
      %15 = arith.addf %12, %14 : vector<8x128xf32>
      %cst_14 = arith.constant 0.000000e+00 : f32
      %16 = vector.broadcast %cst_14 : f32 to vector<8x128xf32>
      %17 = arith.cmpf oge, %15, %16 : vector<8x128xf32>
      %cst_15 = arith.constant 0.00999999977 : f32
      %18 = vector.broadcast %cst_15 : f32 to vector<8x128xf32>
      %19 = arith.mulf %18, %15 : vector<8x128xf32>
      %20 = arith.select %17, %15, %19 : vector<8x128xi1>, vector<8x128xf32>
      %21 = arith.truncf %20 : vector<8x128xf32> to vector<8x128xbf16>
      %c0_16 = arith.constant 0 : index
      %c0_17 = arith.constant 0 : index
      %22 = vector.load %arg6[%c0_16, %c0_17] : memref<8x128xbf16, #tpu.memory_space<vmem>>, vector<8x128xbf16>
      tpu.vector_store %arg6[%c0_16, %c0_17], %21 {strides = array<i32>} : memref<8x128xbf16, #tpu.memory_space<vmem>>, vector<8x128xbf16>,
    } else {
    }
    return
  }
  func.func @transform_0(%arg0: i32, %arg1: i32, %arg2: i32) -> (i32, i32) {
    %c0_i32 = arith.constant 0 : i32
    return %arg0, %arg2 : i32, i32
  }
  func.func @transform_1(%arg0: i32, %arg1: i32, %arg2: i32) -> (i32, i32) {
    %c0_i32 = arith.constant 0 : i32
    return %arg2, %arg1 : i32, i32
  }
  func.func @transform_2(%arg0: i32, %arg1: i32, %arg2: i32) -> (i32, i32) {
    %c0_i32 = arith.constant 0 : i32
    %c0_i32_0 = arith.constant 0 : i32
    return %arg0, %c0_i32 : i32, i32
  }
  func.func @transform_3(%arg0: i32, %arg1: i32, %arg2: i32) -> (i32, i32) {
    %c0_i32 = arith.constant 0 : i32
    return %arg0, %arg1 : i32, i32
  }
}

module attributes {stable_mosaic.version = 11 : i64} {
  func.func @_gemm_T_kernel(%arg0: i32, %arg1: i32, %arg2: i32, %arg3: memref<16x128xbf16, #tpu.memory_space<vmem>>, %arg4: memref<128x32xbf16, #tpu.memory_space<vmem>>, %arg5: memref<16x1xf32, #tpu.memory_space<vmem>>, %arg6: memref<16x32xbf16, #tpu.memory_space<vmem>>, %arg7: memref<16x32xf32, #tpu.memory_space<vmem>>) attributes {dimension_semantics = [#tpu.dimension_semantics<parallel>, #tpu.dimension_semantics<parallel>, #tpu.dimension_semantics<arbitrary>], iteration_bounds = array<i64: 1, 1, 1>, scalar_prefetch = 0 : i64, scratch_operands = 1 : i64, tpu.core_type = #tpu.core_type<tc>, window_params = [{transform_indices = @transform_0, window_bounds = array<i64: 16, 128>}, {transform_indices = @transform_1, window_bounds = array<i64: 128, 32>}, {transform_indices = @transform_2, window_bounds = array<i64: 16, 1>}, {transform_indices = @transform_3, window_bounds = array<i64: 16, 32>}]} {
    %c0_i32 = arith.constant 0 : i32
    %0 = arith.cmpi eq, %arg2, %c0_i32 : i32
    %1 = arith.extui %0 : i1 to i32
    %c0_i32_0 = arith.constant 0 : i32
    %2 = arith.cmpi ne, %1, %c0_i32_0 : i32
    scf.if %2 {
      %cst_10 = arith.constant 0.000000e+00 : f32
      %12 = vector.broadcast %cst_10 : f32 to vector<16x32xf32>
      %c0_11 = arith.constant 0 : index
      %c0_12 = arith.constant 0 : index
      %13 = vector.load %arg7[%c0_11, %c0_12] : memref<16x32xf32, #tpu.memory_space<vmem>>, vector<16x32xf32>
      tpu.vector_store %arg7[%c0_11, %c0_12], %12 {strides = array<i32>} : memref<16x32xf32, #tpu.memory_space<vmem>>, vector<16x32xf32>,
    } else {
    }
    %c0 = arith.constant 0 : index
    %c0_1 = arith.constant 0 : index
    %3 = vector.load %arg7[%c0, %c0_1] : memref<16x32xf32, #tpu.memory_space<vmem>>, vector<16x32xf32>
    %c0_2 = arith.constant 0 : index
    %c0_3 = arith.constant 0 : index
    %4 = vector.load %arg3[%c0_2, %c0_3] : memref<16x128xbf16, #tpu.memory_space<vmem>>, vector<16x128xbf16>
    %c0_4 = arith.constant 0 : index
    %c0_5 = arith.constant 0 : index
    %5 = vector.load %arg4[%c0_4, %c0_5] : memref<128x32xbf16, #tpu.memory_space<vmem>>, vector<128x32xbf16>
    %cst = arith.constant dense<0.000000e+00> : vector<16x32xf32>
    %6 = tpu.matmul %4, %5, %cst {dimension_numbers = #tpu.dot_dimension_numbers<[1], [0], [0], [1], [0, 0, 1, 1], [], []>} : vector<16x128xbf16>, vector<128x32xbf16>, vector<16x32xf32> -> vector<16x32xf32>
    %7 = arith.addf %3, %6 : vector<16x32xf32>
    %c0_6 = arith.constant 0 : index
    %c0_7 = arith.constant 0 : index
    %8 = vector.load %arg7[%c0_6, %c0_7] : memref<16x32xf32, #tpu.memory_space<vmem>>, vector<16x32xf32>
    tpu.vector_store %arg7[%c0_6, %c0_7], %7 {strides = array<i32>} : memref<16x32xf32, #tpu.memory_space<vmem>>, vector<16x32xf32>,
    %c0_i32_8 = arith.constant 0 : i32
    %9 = arith.cmpi eq, %arg2, %c0_i32_8 : i32
    %10 = arith.extui %9 : i1 to i32
    %c0_i32_9 = arith.constant 0 : i32
    %11 = arith.cmpi ne, %10, %c0_i32_9 : i32
    scf.if %11 {
      %c0_10 = arith.constant 0 : index
      %c0_11 = arith.constant 0 : index
      %12 = vector.load %arg7[%c0_10, %c0_11] : memref<16x32xf32, #tpu.memory_space<vmem>>, vector<16x32xf32>
      %c0_12 = arith.constant 0 : index
      %c0_13 = arith.constant 0 : index
      %13 = vector.load %arg5[%c0_12, %c0_13] : memref<16x1xf32, #tpu.memory_space<vmem>>, vector<16x1xf32>
      %14 = vector.broadcast %13 : vector<16x1xf32> to vector<16x32xf32>
      %15 = arith.addf %12, %14 : vector<16x32xf32>
      %cst_14 = arith.constant 0.000000e+00 : f32
      %16 = vector.broadcast %cst_14 : f32 to vector<16x32xf32>
      %17 = arith.cmpf oge, %15, %16 : vector<16x32xf32>
      %cst_15 = arith.constant 0.00999999977 : f32
      %18 = vector.broadcast %cst_15 : f32 to vector<16x32xf32>
      %19 = arith.mulf %18, %15 : vector<16x32xf32>
      %20 = arith.select %17, %15, %19 : vector<16x32xi1>, vector<16x32xf32>
      %21 = arith.truncf %20 : vector<16x32xf32> to vector<16x32xbf16>
      %c0_16 = arith.constant 0 : index
      %c0_17 = arith.constant 0 : index
      %22 = vector.load %arg6[%c0_16, %c0_17] : memref<16x32xbf16, #tpu.memory_space<vmem>>, vector<16x32xbf16>
      tpu.vector_store %arg6[%c0_16, %c0_17], %21 {strides = array<i32>} : memref<16x32xbf16, #tpu.memory_space<vmem>>, vector<16x32xbf16>,
    } else {
    }
    return
  }
  func.func @transform_0(%arg0: i32, %arg1: i32, %arg2: i32) -> (i32, i32) {
    %c0_i32 = arith.constant 0 : i32
    return %arg0, %arg2 : i32, i32
  }
  func.func @transform_1(%arg0: i32, %arg1: i32, %arg2: i32) -> (i32, i32) {
    %c0_i32 = arith.constant 0 : i32
    return %arg2, %arg1 : i32, i32
  }
  func.func @transform_2(%arg0: i32, %arg1: i32, %arg2: i32) -> (i32, i32) {
    %c0_i32 = arith.constant 0 : i32
    %c0_i32_0 = arith.constant 0 : i32
    return %arg0, %c0_i32 : i32, i32
  }
  func.func @transform_3(%arg0: i32, %arg1: i32, %arg2: i32) -> (i32, i32) {
    %c0_i32 = arith.constant 0 : i32
    return %arg0, %arg1 : i32, i32
  }
}

module attributes {stable_mosaic.version = 11 : i64} {
  func.func @_head_kernel(%arg0: i32, %arg1: memref<2x6x6x16xbf16, #tpu.memory_space<vmem>>, %arg2: memref<9x16xf32, #tpu.memory_space<vmem>>, %arg3: memref<16x16x8xf32, #tpu.memory_space<vmem>>, %arg4: memref<2x4x4xf32, #tpu.memory_space<vmem>>, %arg5: memref<2x8xf32, #tpu.memory_space<vmem>>) attributes {dimension_semantics = [#tpu.dimension_semantics<arbitrary>], iteration_bounds = array<i64: 1>, scalar_prefetch = 0 : i64, scratch_operands = 0 : i64, tpu.core_type = #tpu.core_type<tc>, window_params = [{pipeline_mode = #tpu.pipeline_mode<synchronous>, transform_indices = @transform_0, window_bounds = array<i64: 2, 6, 6, 16>}, {pipeline_mode = #tpu.pipeline_mode<synchronous>, transform_indices = @transform_1, window_bounds = array<i64: 9, 16>}, {pipeline_mode = #tpu.pipeline_mode<synchronous>, transform_indices = @transform_2, window_bounds = array<i64: 16, 16, 8>}, {pipeline_mode = #tpu.pipeline_mode<synchronous>, transform_indices = @transform_3, window_bounds = array<i64: 2, 4, 4>}, {pipeline_mode = #tpu.pipeline_mode<synchronous>, transform_indices = @transform_4, window_bounds = array<i64: 2, 8>}]} {
    %cst = arith.constant 0.000000e+00 : f32
    %0 = vector.broadcast %cst : f32 to vector<2x4x4xf32>
    %c0 = arith.constant 0 : index
    %c0_0 = arith.constant 0 : index
    %c0_1 = arith.constant 0 : index
    %c0_2 = arith.constant 0 : index
    %1 = vector.load %arg1[%c0, %c0_0, %c0_1, %c0_2] : memref<2x6x6x16xbf16, #tpu.memory_space<vmem>>, vector<2x4x4x16xbf16>
    %2 = arith.extf %1 : vector<2x4x4x16xbf16> to vector<2x4x4x16xf32>
    %c0_3 = arith.constant 0 : index
    %c0_4 = arith.constant 0 : index
    %3 = vector.load %arg2[%c0_3, %c0_4] : memref<9x16xf32, #tpu.memory_space<vmem>>, vector<1x16xf32>
    %4 = vector.shape_cast %3 : vector<1x16xf32> to vector<16xf32>
    %5 = vector.shape_cast %4 : vector<16xf32> to vector<1x1x1x16xf32>
    %6 = vector.broadcast %5 : vector<1x1x1x16xf32> to vector<2x4x4x16xf32>
    %7 = arith.mulf %2, %6 : vector<2x4x4x16xf32>
    %cst_5 = arith.constant dense<0.000000e+00> : vector<2x4x4xf32>
    %8 = vector.multi_reduction <add>, %7, %cst_5 [3] : vector<2x4x4x16xf32> to vector<2x4x4xf32>
    %9 = arith.addf %0, %8 : vector<2x4x4xf32>
    %c0_6 = arith.constant 0 : index
    %c0_7 = arith.constant 0 : index
    %c1 = arith.constant 1 : index
    %c0_8 = arith.constant 0 : index
    %10 = vector.load %arg1[%c0_6, %c0_7, %c1, %c0_8] : memref<2x6x6x16xbf16, #tpu.memory_space<vmem>>, vector<2x4x4x16xbf16>
    %11 = arith.extf %10 : vector<2x4x4x16xbf16> to vector<2x4x4x16xf32>
    %c1_9 = arith.constant 1 : index
    %c0_10 = arith.constant 0 : index
    %12 = vector.load %arg2[%c1_9, %c0_10] : memref<9x16xf32, #tpu.memory_space<vmem>>, vector<1x16xf32>
    %13 = vector.shape_cast %12 : vector<1x16xf32> to vector<16xf32>
    %14 = vector.shape_cast %13 : vector<16xf32> to vector<1x1x1x16xf32>
    %15 = vector.broadcast %14 : vector<1x1x1x16xf32> to vector<2x4x4x16xf32>
    %16 = arith.mulf %11, %15 : vector<2x4x4x16xf32>
    %cst_11 = arith.constant dense<0.000000e+00> : vector<2x4x4xf32>
    %17 = vector.multi_reduction <add>, %16, %cst_11 [3] : vector<2x4x4x16xf32> to vector<2x4x4xf32>
    %18 = arith.addf %9, %17 : vector<2x4x4xf32>
    %c0_12 = arith.constant 0 : index
    %c0_13 = arith.constant 0 : index
    %c2 = arith.constant 2 : index
    %c0_14 = arith.constant 0 : index
    %19 = vector.load %arg1[%c0_12, %c0_13, %c2, %c0_14] : memref<2x6x6x16xbf16, #tpu.memory_space<vmem>>, vector<2x4x4x16xbf16>
    %20 = arith.extf %19 : vector<2x4x4x16xbf16> to vector<2x4x4x16xf32>
    %c2_15 = arith.constant 2 : index
    %c0_16 = arith.constant 0 : index
    %21 = vector.load %arg2[%c2_15, %c0_16] : memref<9x16xf32, #tpu.memory_space<vmem>>, vector<1x16xf32>
    %22 = vector.shape_cast %21 : vector<1x16xf32> to vector<16xf32>
    %23 = vector.shape_cast %22 : vector<16xf32> to vector<1x1x1x16xf32>
    %24 = vector.broadcast %23 : vector<1x1x1x16xf32> to vector<2x4x4x16xf32>
    %25 = arith.mulf %20, %24 : vector<2x4x4x16xf32>
    %cst_17 = arith.constant dense<0.000000e+00> : vector<2x4x4xf32>
    %26 = vector.multi_reduction <add>, %25, %cst_17 [3] : vector<2x4x4x16xf32> to vector<2x4x4xf32>
    %27 = arith.addf %18, %26 : vector<2x4x4xf32>
    %c0_18 = arith.constant 0 : index
    %c1_19 = arith.constant 1 : index
    %c0_20 = arith.constant 0 : index
    %c0_21 = arith.constant 0 : index
    %28 = vector.load %arg1[%c0_18, %c1_19, %c0_20, %c0_21] : memref<2x6x6x16xbf16, #tpu.memory_space<vmem>>, vector<2x4x4x16xbf16>
    %29 = arith.extf %28 : vector<2x4x4x16xbf16> to vector<2x4x4x16xf32>
    %c3 = arith.constant 3 : index
    %c0_22 = arith.constant 0 : index
    %30 = vector.load %arg2[%c3, %c0_22] : memref<9x16xf32, #tpu.memory_space<vmem>>, vector<1x16xf32>
    %31 = vector.shape_cast %30 : vector<1x16xf32> to vector<16xf32>
    %32 = vector.shape_cast %31 : vector<16xf32> to vector<1x1x1x16xf32>
    %33 = vector.broadcast %32 : vector<1x1x1x16xf32> to vector<2x4x4x16xf32>
    %34 = arith.mulf %29, %33 : vector<2x4x4x16xf32>
    %cst_23 = arith.constant dense<0.000000e+00> : vector<2x4x4xf32>
    %35 = vector.multi_reduction <add>, %34, %cst_23 [3] : vector<2x4x4x16xf32> to vector<2x4x4xf32>
    %36 = arith.addf %27, %35 : vector<2x4x4xf32>
    %c0_24 = arith.constant 0 : index
    %c1_25 = arith.constant 1 : index
    %c1_26 = arith.constant 1 : index
    %c0_27 = arith.constant 0 : index
    %37 = vector.load %arg1[%c0_24, %c1_25, %c1_26, %c0_27] : memref<2x6x6x16xbf16, #tpu.memory_space<vmem>>, vector<2x4x4x16xbf16>
    %38 = arith.extf %37 : vector<2x4x4x16xbf16> to vector<2x4x4x16xf32>
    %c4 = arith.constant 4 : index
    %c0_28 = arith.constant 0 : index
    %39 = vector.load %arg2[%c4, %c0_28] : memref<9x16xf32, #tpu.memory_space<vmem>>, vector<1x16xf32>
    %40 = vector.shape_cast %39 : vector<1x16xf32> to vector<16xf32>
    %41 = vector.shape_cast %40 : vector<16xf32> to vector<1x1x1x16xf32>
    %42 = vector.broadcast %41 : vector<1x1x1x16xf32> to vector<2x4x4x16xf32>
    %43 = arith.mulf %38, %42 : vector<2x4x4x16xf32>
    %cst_29 = arith.constant dense<0.000000e+00> : vector<2x4x4xf32>
    %44 = vector.multi_reduction <add>, %43, %cst_29 [3] : vector<2x4x4x16xf32> to vector<2x4x4xf32>
    %45 = arith.addf %36, %44 : vector<2x4x4xf32>
    %c0_30 = arith.constant 0 : index
    %c1_31 = arith.constant 1 : index
    %c2_32 = arith.constant 2 : index
    %c0_33 = arith.constant 0 : index
    %46 = vector.load %arg1[%c0_30, %c1_31, %c2_32, %c0_33] : memref<2x6x6x16xbf16, #tpu.memory_space<vmem>>, vector<2x4x4x16xbf16>
    %47 = arith.extf %46 : vector<2x4x4x16xbf16> to vector<2x4x4x16xf32>
    %c5 = arith.constant 5 : index
    %c0_34 = arith.constant 0 : index
    %48 = vector.load %arg2[%c5, %c0_34] : memref<9x16xf32, #tpu.memory_space<vmem>>, vector<1x16xf32>
    %49 = vector.shape_cast %48 : vector<1x16xf32> to vector<16xf32>
    %50 = vector.shape_cast %49 : vector<16xf32> to vector<1x1x1x16xf32>
    %51 = vector.broadcast %50 : vector<1x1x1x16xf32> to vector<2x4x4x16xf32>
    %52 = arith.mulf %47, %51 : vector<2x4x4x16xf32>
    %cst_35 = arith.constant dense<0.000000e+00> : vector<2x4x4xf32>
    %53 = vector.multi_reduction <add>, %52, %cst_35 [3] : vector<2x4x4x16xf32> to vector<2x4x4xf32>
    %54 = arith.addf %45, %53 : vector<2x4x4xf32>
    %c0_36 = arith.constant 0 : index
    %c2_37 = arith.constant 2 : index
    %c0_38 = arith.constant 0 : index
    %c0_39 = arith.constant 0 : index
    %55 = vector.load %arg1[%c0_36, %c2_37, %c0_38, %c0_39] : memref<2x6x6x16xbf16, #tpu.memory_space<vmem>>, vector<2x4x4x16xbf16>
    %56 = arith.extf %55 : vector<2x4x4x16xbf16> to vector<2x4x4x16xf32>
    %c6 = arith.constant 6 : index
    %c0_40 = arith.constant 0 : index
    %57 = vector.load %arg2[%c6, %c0_40] : memref<9x16xf32, #tpu.memory_space<vmem>>, vector<1x16xf32>
    %58 = vector.shape_cast %57 : vector<1x16xf32> to vector<16xf32>
    %59 = vector.shape_cast %58 : vector<16xf32> to vector<1x1x1x16xf32>
    %60 = vector.broadcast %59 : vector<1x1x1x16xf32> to vector<2x4x4x16xf32>
    %61 = arith.mulf %56, %60 : vector<2x4x4x16xf32>
    %cst_41 = arith.constant dense<0.000000e+00> : vector<2x4x4xf32>
    %62 = vector.multi_reduction <add>, %61, %cst_41 [3] : vector<2x4x4x16xf32> to vector<2x4x4xf32>
    %63 = arith.addf %54, %62 : vector<2x4x4xf32>
    %c0_42 = arith.constant 0 : index
    %c2_43 = arith.constant 2 : index
    %c1_44 = arith.constant 1 : index
    %c0_45 = arith.constant 0 : index
    %64 = vector.load %arg1[%c0_42, %c2_43, %c1_44, %c0_45] : memref<2x6x6x16xbf16, #tpu.memory_space<vmem>>, vector<2x4x4x16xbf16>
    %65 = arith.extf %64 : vector<2x4x4x16xbf16> to vector<2x4x4x16xf32>
    %c7 = arith.constant 7 : index
    %c0_46 = arith.constant 0 : index
    %66 = vector.load %arg2[%c7, %c0_46] : memref<9x16xf32, #tpu.memory_space<vmem>>, vector<1x16xf32>
    %67 = vector.shape_cast %66 : vector<1x16xf32> to vector<16xf32>
    %68 = vector.shape_cast %67 : vector<16xf32> to vector<1x1x1x16xf32>
    %69 = vector.broadcast %68 : vector<1x1x1x16xf32> to vector<2x4x4x16xf32>
    %70 = arith.mulf %65, %69 : vector<2x4x4x16xf32>
    %cst_47 = arith.constant dense<0.000000e+00> : vector<2x4x4xf32>
    %71 = vector.multi_reduction <add>, %70, %cst_47 [3] : vector<2x4x4x16xf32> to vector<2x4x4xf32>
    %72 = arith.addf %63, %71 : vector<2x4x4xf32>
    %c0_48 = arith.constant 0 : index
    %c2_49 = arith.constant 2 : index
    %c2_50 = arith.constant 2 : index
    %c0_51 = arith.constant 0 : index
    %73 = vector.load %arg1[%c0_48, %c2_49, %c2_50, %c0_51] : memref<2x6x6x16xbf16, #tpu.memory_space<vmem>>, vector<2x4x4x16xbf16>
    %74 = arith.extf %73 : vector<2x4x4x16xbf16> to vector<2x4x4x16xf32>
    %c8 = arith.constant 8 : index
    %c0_52 = arith.constant 0 : index
    %75 = vector.load %arg2[%c8, %c0_52] : memref<9x16xf32, #tpu.memory_space<vmem>>, vector<1x16xf32>
    %76 = vector.shape_cast %75 : vector<1x16xf32> to vector<16xf32>
    %77 = vector.shape_cast %76 : vector<16xf32> to vector<1x1x1x16xf32>
    %78 = vector.broadcast %77 : vector<1x1x1x16xf32> to vector<2x4x4x16xf32>
    %79 = arith.mulf %74, %78 : vector<2x4x4x16xf32>
    %cst_53 = arith.constant dense<0.000000e+00> : vector<2x4x4xf32>
    %80 = vector.multi_reduction <add>, %79, %cst_53 [3] : vector<2x4x4x16xf32> to vector<2x4x4xf32>
    %81 = arith.addf %72, %80 : vector<2x4x4xf32>
    %c0_54 = arith.constant 0 : index
    %c0_55 = arith.constant 0 : index
    %c0_56 = arith.constant 0 : index
    %82 = vector.load %arg4[%c0_54, %c0_55, %c0_56] : memref<2x4x4xf32, #tpu.memory_space<vmem>>, vector<2x4x4xf32>
    tpu.vector_store %arg4[%c0_54, %c0_55, %c0_56], %81 {strides = array<i32>} : memref<2x4x4xf32, #tpu.memory_space<vmem>>, vector<2x4x4xf32>,
    %cst_57 = arith.constant 0.000000e+00 : f32
    %83 = vector.broadcast %cst_57 : f32 to vector<2x8xf32>
    %84 = vector.extract_strided_slice %38 {offsets = [0, 0, 0, 0], sizes = [2, 1, 1, 16], strides = [1, 1, 1, 1]} : vector<2x4x4x16xf32> to vector<2x1x1x16xf32>
    %85 = vector.shape_cast %84 : vector<2x1x1x16xf32> to vector<2x16xf32>
    %c0_58 = arith.constant 0 : index
    %c0_59 = arith.constant 0 : index
    %c0_60 = arith.constant 0 : index
    %86 = vector.load %arg3[%c0_58, %c0_59, %c0_60] : memref<16x16x8xf32, #tpu.memory_space<vmem>>, vector<1x16x8xf32>
    %87 = vector.shape_cast %86 : vector<1x16x8xf32> to vector<16x8xf32>
    %cst_61 = arith.constant dense<0.000000e+00> : vector<2x8xf32>
    %88 = tpu.matmul %85, %87, %cst_61 {dimension_numbers = #tpu.dot_dimension_numbers<[1], [0], [0], [1], [0, 0, 1, 1], [], []>} : vector<2x16xf32>, vector<16x8xf32>, vector<2x8xf32> -> vector<2x8xf32>
    %89 = arith.addf %83, %88 : vector<2x8xf32>
    %90 = vector.extract_strided_slice %38 {offsets = [0, 0, 1, 0], sizes = [2, 1, 1, 16], strides = [1, 1, 1, 1]} : vector<2x4x4x16xf32> to vector<2x1x1x16xf32>
    %91 = vector.shape_cast %90 : vector<2x1x1x16xf32> to vector<2x16xf32>
    %c1_62 = arith.constant 1 : index
    %c0_63 = arith.constant 0 : index
    %c0_64 = arith.constant 0 : index
    %92 = vector.load %arg3[%c1_62, %c0_63, %c0_64] : memref<16x16x8xf32, #tpu.memory_space<vmem>>, vector<1x16x8xf32>
    %93 = vector.shape_cast %92 : vector<1x16x8xf32> to vector<16x8xf32>
    %cst_65 = arith.constant dense<0.000000e+00> : vector<2x8xf32>
    %94 = tpu.matmul %91, %93, %cst_65 {dimension_numbers = #tpu.dot_dimension_numbers<[1], [0], [0], [1], [0, 0, 1, 1], [], []>} : vector<2x16xf32>, vector<16x8xf32>, vector<2x8xf32> -> vector<2x8xf32>
    %95 = arith.addf %89, %94 : vector<2x8xf32>
    %96 = vector.extract_strided_slice %38 {offsets = [0, 0, 2, 0], sizes = [2, 1, 1, 16], strides = [1, 1, 1, 1]} : vector<2x4x4x16xf32> to vector<2x1x1x16xf32>
    %97 = vector.shape_cast %96 : vector<2x1x1x16xf32> to vector<2x16xf32>
    %c2_66 = arith.constant 2 : index
    %c0_67 = arith.constant 0 : index
    %c0_68 = arith.constant 0 : index
    %98 = vector.load %arg3[%c2_66, %c0_67, %c0_68] : memref<16x16x8xf32, #tpu.memory_space<vmem>>, vector<1x16x8xf32>
    %99 = vector.shape_cast %98 : vector<1x16x8xf32> to vector<16x8xf32>
    %cst_69 = arith.constant dense<0.000000e+00> : vector<2x8xf32>
    %100 = tpu.matmul %97, %99, %cst_69 {dimension_numbers = #tpu.dot_dimension_numbers<[1], [0], [0], [1], [0, 0, 1, 1], [], []>} : vector<2x16xf32>, vector<16x8xf32>, vector<2x8xf32> -> vector<2x8xf32>
    %101 = arith.addf %95, %100 : vector<2x8xf32>
    %102 = vector.extract_strided_slice %38 {offsets = [0, 0, 3, 0], sizes = [2, 1, 1, 16], strides = [1, 1, 1, 1]} : vector<2x4x4x16xf32> to vector<2x1x1x16xf32>
    %103 = vector.shape_cast %102 : vector<2x1x1x16xf32> to vector<2x16xf32>
    %c3_70 = arith.constant 3 : index
    %c0_71 = arith.constant 0 : index
    %c0_72 = arith.constant 0 : index
    %104 = vector.load %arg3[%c3_70, %c0_71, %c0_72] : memref<16x16x8xf32, #tpu.memory_space<vmem>>, vector<1x16x8xf32>
    %105 = vector.shape_cast %104 : vector<1x16x8xf32> to vector<16x8xf32>
    %cst_73 = arith.constant dense<0.000000e+00> : vector<2x8xf32>
    %106 = tpu.matmul %103, %105, %cst_73 {dimension_numbers = #tpu.dot_dimension_numbers<[1], [0], [0], [1], [0, 0, 1, 1], [], []>} : vector<2x16xf32>, vector<16x8xf32>, vector<2x8xf32> -> vector<2x8xf32>
    %107 = arith.addf %101, %106 : vector<2x8xf32>
    %108 = vector.extract_strided_slice %38 {offsets = [0, 1, 0, 0], sizes = [2, 1, 1, 16], strides = [1, 1, 1, 1]} : vector<2x4x4x16xf32> to vector<2x1x1x16xf32>
    %109 = vector.shape_cast %108 : vector<2x1x1x16xf32> to vector<2x16xf32>
    %c4_74 = arith.constant 4 : index
    %c0_75 = arith.constant 0 : index
    %c0_76 = arith.constant 0 : index
    %110 = vector.load %arg3[%c4_74, %c0_75, %c0_76] : memref<16x16x8xf32, #tpu.memory_space<vmem>>, vector<1x16x8xf32>
    %111 = vector.shape_cast %110 : vector<1x16x8xf32> to vector<16x8xf32>
    %cst_77 = arith.constant dense<0.000000e+00> : vector<2x8xf32>
    %112 = tpu.matmul %109, %111, %cst_77 {dimension_numbers = #tpu.dot_dimension_numbers<[1], [0], [0], [1], [0, 0, 1, 1], [], []>} : vector<2x16xf32>, vector<16x8xf32>, vector<2x8xf32> -> vector<2x8xf32>
    %113 = arith.addf %107, %112 : vector<2x8xf32>
    %114 = vector.extract_strided_slice %38 {offsets = [0, 1, 1, 0], sizes = [2, 1, 1, 16], strides = [1, 1, 1, 1]} : vector<2x4x4x16xf32> to vector<2x1x1x16xf32>
    %115 = vector.shape_cast %114 : vector<2x1x1x16xf32> to vector<2x16xf32>
    %c5_78 = arith.constant 5 : index
    %c0_79 = arith.constant 0 : index
    %c0_80 = arith.constant 0 : index
    %116 = vector.load %arg3[%c5_78, %c0_79, %c0_80] : memref<16x16x8xf32, #tpu.memory_space<vmem>>, vector<1x16x8xf32>
    %117 = vector.shape_cast %116 : vector<1x16x8xf32> to vector<16x8xf32>
    %cst_81 = arith.constant dense<0.000000e+00> : vector<2x8xf32>
    %118 = tpu.matmul %115, %117, %cst_81 {dimension_numbers = #tpu.dot_dimension_numbers<[1], [0], [0], [1], [0, 0, 1, 1], [], []>} : vector<2x16xf32>, vector<16x8xf32>, vector<2x8xf32> -> vector<2x8xf32>
    %119 = arith.addf %113, %118 : vector<2x8xf32>
    %120 = vector.extract_strided_slice %38 {offsets = [0, 1, 2, 0], sizes = [2, 1, 1, 16], strides = [1, 1, 1, 1]} : vector<2x4x4x16xf32> to vector<2x1x1x16xf32>
    %121 = vector.shape_cast %120 : vector<2x1x1x16xf32> to vector<2x16xf32>
    %c6_82 = arith.constant 6 : index
    %c0_83 = arith.constant 0 : index
    %c0_84 = arith.constant 0 : index
    %122 = vector.load %arg3[%c6_82, %c0_83, %c0_84] : memref<16x16x8xf32, #tpu.memory_space<vmem>>, vector<1x16x8xf32>
    %123 = vector.shape_cast %122 : vector<1x16x8xf32> to vector<16x8xf32>
    %cst_85 = arith.constant dense<0.000000e+00> : vector<2x8xf32>
    %124 = tpu.matmul %121, %123, %cst_85 {dimension_numbers = #tpu.dot_dimension_numbers<[1], [0], [0], [1], [0, 0, 1, 1], [], []>} : vector<2x16xf32>, vector<16x8xf32>, vector<2x8xf32> -> vector<2x8xf32>
    %125 = arith.addf %119, %124 : vector<2x8xf32>
    %126 = vector.extract_strided_slice %38 {offsets = [0, 1, 3, 0], sizes = [2, 1, 1, 16], strides = [1, 1, 1, 1]} : vector<2x4x4x16xf32> to vector<2x1x1x16xf32>
    %127 = vector.shape_cast %126 : vector<2x1x1x16xf32> to vector<2x16xf32>
    %c7_86 = arith.constant 7 : index
    %c0_87 = arith.constant 0 : index
    %c0_88 = arith.constant 0 : index
    %128 = vector.load %arg3[%c7_86, %c0_87, %c0_88] : memref<16x16x8xf32, #tpu.memory_space<vmem>>, vector<1x16x8xf32>
    %129 = vector.shape_cast %128 : vector<1x16x8xf32> to vector<16x8xf32>
    %cst_89 = arith.constant dense<0.000000e+00> : vector<2x8xf32>
    %130 = tpu.matmul %127, %129, %cst_89 {dimension_numbers = #tpu.dot_dimension_numbers<[1], [0], [0], [1], [0, 0, 1, 1], [], []>} : vector<2x16xf32>, vector<16x8xf32>, vector<2x8xf32> -> vector<2x8xf32>
    %131 = arith.addf %125, %130 : vector<2x8xf32>
    %132 = vector.extract_strided_slice %38 {offsets = [0, 2, 0, 0], sizes = [2, 1, 1, 16], strides = [1, 1, 1, 1]} : vector<2x4x4x16xf32> to vector<2x1x1x16xf32>
    %133 = vector.shape_cast %132 : vector<2x1x1x16xf32> to vector<2x16xf32>
    %c8_90 = arith.constant 8 : index
    %c0_91 = arith.constant 0 : index
    %c0_92 = arith.constant 0 : index
    %134 = vector.load %arg3[%c8_90, %c0_91, %c0_92] : memref<16x16x8xf32, #tpu.memory_space<vmem>>, vector<1x16x8xf32>
    %135 = vector.shape_cast %134 : vector<1x16x8xf32> to vector<16x8xf32>
    %cst_93 = arith.constant dense<0.000000e+00> : vector<2x8xf32>
    %136 = tpu.matmul %133, %135, %cst_93 {dimension_numbers = #tpu.dot_dimension_numbers<[1], [0], [0], [1], [0, 0, 1, 1], [], []>} : vector<2x16xf32>, vector<16x8xf32>, vector<2x8xf32> -> vector<2x8xf32>
    %137 = arith.addf %131, %136 : vector<2x8xf32>
    %138 = vector.extract_strided_slice %38 {offsets = [0, 2, 1, 0], sizes = [2, 1, 1, 16], strides = [1, 1, 1, 1]} : vector<2x4x4x16xf32> to vector<2x1x1x16xf32>
    %139 = vector.shape_cast %138 : vector<2x1x1x16xf32> to vector<2x16xf32>
    %c9 = arith.constant 9 : index
    %c0_94 = arith.constant 0 : index
    %c0_95 = arith.constant 0 : index
    %140 = vector.load %arg3[%c9, %c0_94, %c0_95] : memref<16x16x8xf32, #tpu.memory_space<vmem>>, vector<1x16x8xf32>
    %141 = vector.shape_cast %140 : vector<1x16x8xf32> to vector<16x8xf32>
    %cst_96 = arith.constant dense<0.000000e+00> : vector<2x8xf32>
    %142 = tpu.matmul %139, %141, %cst_96 {dimension_numbers = #tpu.dot_dimension_numbers<[1], [0], [0], [1], [0, 0, 1, 1], [], []>} : vector<2x16xf32>, vector<16x8xf32>, vector<2x8xf32> -> vector<2x8xf32>
    %143 = arith.addf %137, %142 : vector<2x8xf32>
    %144 = vector.extract_strided_slice %38 {offsets = [0, 2, 2, 0], sizes = [2, 1, 1, 16], strides = [1, 1, 1, 1]} : vector<2x4x4x16xf32> to vector<2x1x1x16xf32>
    %145 = vector.shape_cast %144 : vector<2x1x1x16xf32> to vector<2x16xf32>
    %c10 = arith.constant 10 : index
    %c0_97 = arith.constant 0 : index
    %c0_98 = arith.constant 0 : index
    %146 = vector.load %arg3[%c10, %c0_97, %c0_98] : memref<16x16x8xf32, #tpu.memory_space<vmem>>, vector<1x16x8xf32>
    %147 = vector.shape_cast %146 : vector<1x16x8xf32> to vector<16x8xf32>
    %cst_99 = arith.constant dense<0.000000e+00> : vector<2x8xf32>
    %148 = tpu.matmul %145, %147, %cst_99 {dimension_numbers = #tpu.dot_dimension_numbers<[1], [0], [0], [1], [0, 0, 1, 1], [], []>} : vector<2x16xf32>, vector<16x8xf32>, vector<2x8xf32> -> vector<2x8xf32>
    %149 = arith.addf %143, %148 : vector<2x8xf32>
    %150 = vector.extract_strided_slice %38 {offsets = [0, 2, 3, 0], sizes = [2, 1, 1, 16], strides = [1, 1, 1, 1]} : vector<2x4x4x16xf32> to vector<2x1x1x16xf32>
    %151 = vector.shape_cast %150 : vector<2x1x1x16xf32> to vector<2x16xf32>
    %c11 = arith.constant 11 : index
    %c0_100 = arith.constant 0 : index
    %c0_101 = arith.constant 0 : index
    %152 = vector.load %arg3[%c11, %c0_100, %c0_101] : memref<16x16x8xf32, #tpu.memory_space<vmem>>, vector<1x16x8xf32>
    %153 = vector.shape_cast %152 : vector<1x16x8xf32> to vector<16x8xf32>
    %cst_102 = arith.constant dense<0.000000e+00> : vector<2x8xf32>
    %154 = tpu.matmul %151, %153, %cst_102 {dimension_numbers = #tpu.dot_dimension_numbers<[1], [0], [0], [1], [0, 0, 1, 1], [], []>} : vector<2x16xf32>, vector<16x8xf32>, vector<2x8xf32> -> vector<2x8xf32>
    %155 = arith.addf %149, %154 : vector<2x8xf32>
    %156 = vector.extract_strided_slice %38 {offsets = [0, 3, 0, 0], sizes = [2, 1, 1, 16], strides = [1, 1, 1, 1]} : vector<2x4x4x16xf32> to vector<2x1x1x16xf32>
    %157 = vector.shape_cast %156 : vector<2x1x1x16xf32> to vector<2x16xf32>
    %c12 = arith.constant 12 : index
    %c0_103 = arith.constant 0 : index
    %c0_104 = arith.constant 0 : index
    %158 = vector.load %arg3[%c12, %c0_103, %c0_104] : memref<16x16x8xf32, #tpu.memory_space<vmem>>, vector<1x16x8xf32>
    %159 = vector.shape_cast %158 : vector<1x16x8xf32> to vector<16x8xf32>
    %cst_105 = arith.constant dense<0.000000e+00> : vector<2x8xf32>
    %160 = tpu.matmul %157, %159, %cst_105 {dimension_numbers = #tpu.dot_dimension_numbers<[1], [0], [0], [1], [0, 0, 1, 1], [], []>} : vector<2x16xf32>, vector<16x8xf32>, vector<2x8xf32> -> vector<2x8xf32>
    %161 = arith.addf %155, %160 : vector<2x8xf32>
    %162 = vector.extract_strided_slice %38 {offsets = [0, 3, 1, 0], sizes = [2, 1, 1, 16], strides = [1, 1, 1, 1]} : vector<2x4x4x16xf32> to vector<2x1x1x16xf32>
    %163 = vector.shape_cast %162 : vector<2x1x1x16xf32> to vector<2x16xf32>
    %c13 = arith.constant 13 : index
    %c0_106 = arith.constant 0 : index
    %c0_107 = arith.constant 0 : index
    %164 = vector.load %arg3[%c13, %c0_106, %c0_107] : memref<16x16x8xf32, #tpu.memory_space<vmem>>, vector<1x16x8xf32>
    %165 = vector.shape_cast %164 : vector<1x16x8xf32> to vector<16x8xf32>
    %cst_108 = arith.constant dense<0.000000e+00> : vector<2x8xf32>
    %166 = tpu.matmul %163, %165, %cst_108 {dimension_numbers = #tpu.dot_dimension_numbers<[1], [0], [0], [1], [0, 0, 1, 1], [], []>} : vector<2x16xf32>, vector<16x8xf32>, vector<2x8xf32> -> vector<2x8xf32>
    %167 = arith.addf %161, %166 : vector<2x8xf32>
    %168 = vector.extract_strided_slice %38 {offsets = [0, 3, 2, 0], sizes = [2, 1, 1, 16], strides = [1, 1, 1, 1]} : vector<2x4x4x16xf32> to vector<2x1x1x16xf32>
    %169 = vector.shape_cast %168 : vector<2x1x1x16xf32> to vector<2x16xf32>
    %c14 = arith.constant 14 : index
    %c0_109 = arith.constant 0 : index
    %c0_110 = arith.constant 0 : index
    %170 = vector.load %arg3[%c14, %c0_109, %c0_110] : memref<16x16x8xf32, #tpu.memory_space<vmem>>, vector<1x16x8xf32>
    %171 = vector.shape_cast %170 : vector<1x16x8xf32> to vector<16x8xf32>
    %cst_111 = arith.constant dense<0.000000e+00> : vector<2x8xf32>
    %172 = tpu.matmul %169, %171, %cst_111 {dimension_numbers = #tpu.dot_dimension_numbers<[1], [0], [0], [1], [0, 0, 1, 1], [], []>} : vector<2x16xf32>, vector<16x8xf32>, vector<2x8xf32> -> vector<2x8xf32>
    %173 = arith.addf %167, %172 : vector<2x8xf32>
    %174 = vector.extract_strided_slice %38 {offsets = [0, 3, 3, 0], sizes = [2, 1, 1, 16], strides = [1, 1, 1, 1]} : vector<2x4x4x16xf32> to vector<2x1x1x16xf32>
    %175 = vector.shape_cast %174 : vector<2x1x1x16xf32> to vector<2x16xf32>
    %c15 = arith.constant 15 : index
    %c0_112 = arith.constant 0 : index
    %c0_113 = arith.constant 0 : index
    %176 = vector.load %arg3[%c15, %c0_112, %c0_113] : memref<16x16x8xf32, #tpu.memory_space<vmem>>, vector<1x16x8xf32>
    %177 = vector.shape_cast %176 : vector<1x16x8xf32> to vector<16x8xf32>
    %cst_114 = arith.constant dense<0.000000e+00> : vector<2x8xf32>
    %178 = tpu.matmul %175, %177, %cst_114 {dimension_numbers = #tpu.dot_dimension_numbers<[1], [0], [0], [1], [0, 0, 1, 1], [], []>} : vector<2x16xf32>, vector<16x8xf32>, vector<2x8xf32> -> vector<2x8xf32>
    %179 = arith.addf %173, %178 : vector<2x8xf32>
    %c0_115 = arith.constant 0 : index
    %c0_116 = arith.constant 0 : index
    %180 = vector.load %arg5[%c0_115, %c0_116] : memref<2x8xf32, #tpu.memory_space<vmem>>, vector<2x8xf32>
    tpu.vector_store %arg5[%c0_115, %c0_116], %179 {strides = array<i32>} : memref<2x8xf32, #tpu.memory_space<vmem>>, vector<2x8xf32>,
    return
  }
  func.func @transform_0(%arg0: i32) -> (i32, i32, i32, i32) {
    %c0_i32 = arith.constant 0 : i32
    %c0_i32_0 = arith.constant 0 : i32
    %c0_i32_1 = arith.constant 0 : i32
    %c0_i32_2 = arith.constant 0 : i32
    %c0_i32_3 = arith.constant 0 : i32
    return %c0_i32, %c0_i32_0, %c0_i32_1, %c0_i32_2 : i32, i32, i32, i32
  }
  func.func @transform_1(%arg0: i32) -> (i32, i32) {
    %c0_i32 = arith.constant 0 : i32
    %c0_i32_0 = arith.constant 0 : i32
    %c0_i32_1 = arith.constant 0 : i32
    return %c0_i32, %c0_i32_0 : i32, i32
  }
  func.func @transform_2(%arg0: i32) -> (i32, i32, i32) {
    %c0_i32 = arith.constant 0 : i32
    %c0_i32_0 = arith.constant 0 : i32
    %c0_i32_1 = arith.constant 0 : i32
    %c0_i32_2 = arith.constant 0 : i32
    return %c0_i32, %c0_i32_0, %c0_i32_1 : i32, i32, i32
  }
  func.func @transform_3(%arg0: i32) -> (i32, i32, i32) {
    %c0_i32 = arith.constant 0 : i32
    %c0_i32_0 = arith.constant 0 : i32
    %c0_i32_1 = arith.constant 0 : i32
    %c0_i32_2 = arith.constant 0 : i32
    return %c0_i32, %c0_i32_0, %c0_i32_1 : i32, i32, i32
  }
  func.func @transform_4(%arg0: i32) -> (i32, i32) {
    %c0_i32 = arith.constant 0 : i32
    %c0_i32_0 = arith.constant 0 : i32
    %c0_i32_1 = arith.constant 0 : i32
    return %c0_i32, %c0_i32_0 : i32, i32
  }
}

</mosaic_0001>

<bundles_post_ra>
// kernel: discriminator_forward.3
= control target key start
LH: loop header
LB: loop body
LE: loop exit
PB: predicated region body
PF: predicated region fallthrough
CT: control target
= control target key end

     0   :  { %v137_v0 = vmov 0.0   ;;  %vm138_vm0 = vmmov 0   ;;  %v139_v2 = vmov 0   ;;  %vm46_vm1 = vcmask 392192   ;;  %s178_s1 = inlined_call_operand.vmem [shape: bf16[48,128], index: 1, kind: input, shape index: {}]   ;;  %s179_s2 = inlined_call_operand.vmem [shape: f32[8,1], index: 2, kind: input, shape index: {}]   ;;  %s180_s0 = inlined_call_operand.vmem [shape: bf16[8,48], index: 0, kind: input, shape index: {}]   ;;  %s181_s3 = inlined_call_operand.vmem [shape: bf16[8,128], index: 3, kind: output, shape index: {}]  }
   0x1   :  { %120 = vmatprep.subr.bf16.mxu0 %v137_v0  ;;  %v134_v1 = vld [vmem:[%s178_s1] sm:$0xff]   ;;  %126 = vmatprep.mubr.msk.bf16.mxu0 %vm138_vm0, %v137_v0  ;;  %v135_v3 = vld [vmem:[%s178_s1 + $0x8] sm:$0xff]   ;;  %v136_v5 = vld [vmem:[%s178_s1 + $0x10] sm:$0xff]  }
   0x2   :  { %133 = vset.pattern.permute.xlu0 %v139_v2  ;;  %121 = vmatpush3.bf16.msra.mxu0 %v134_v1  ;;  %v96_v4 = vld [vmem:[%s179_s2] sm:$0xff] }
   0x3   :  { %122 = vmatprep.subr.bf16.mxu0 %v137_v0  ;;  %99 = vperm.xlu0 %133, %v96_v4   ;;  %v21_v6 = vld [vmem:[%s180_s0] sm:$0xf] }
   0x6   :  { %123 = vmatpush3.bf16.msra.mxu0 %v135_v3 }
   0x7   :  { %124 = vmatprep.subr.bf16.mxu0 %v137_v0 }
   0xa   :  { %125 = vmatpush3.bf16.msra.mxu0 %v136_v5 }
   0xd   :  { %127 = vmatmul.mubr.msk.bf16.vlgmr.msra.gmra.mrb[0].mxu0 %vm46_vm1, %v21_v6 }
  0x82   :  { %v100_v7 = vpop.permute.xlu0 %99 }
  0xe0   :  { %v84_v8 = vpop.f32.mrb[0].mxu0 }
  0xe1   :  { %v102_v9 = vadd.f32 %v100_v7, %v84_v8  ;;  %v128_v10 = vpop.f32.mrb[1].mxu0 }
  0xe2   :  { %v87_v11 = vpop.f32.mrb[2].mxu0 }
  0xe3   :  { %vm103_vm2 = vcmp.ge.f32.partialorder %v102_v9, 0.0  ;;  %v104_v12 = vmul.f32 0.01, %v102_v9  ;;  %v129_v13 = vpop.f32.mrb[3].mxu0 }
  0xe5   :  { %v105_v14 = vsel %vm103_vm2, %v102_v9, %v104_v12 }
  0xe6   :  { %v106_v15 = vpack.c.bf16 %v105_v14, %v105_v14 }
  0xe8   :  { %107 = vst [vmem:[%s181_s3] sm:$0xf] %v106_v15 }

// kernel: discriminator_forward.4
= control target key start
LH: loop header
LB: loop body
LE: loop exit
PB: predicated region body
PF: predicated region fallthrough
CT: control target
= control target key end

     0   :  { %vm19_vm0 = vcmask 261120   ;;  %v237_v0 = vmov 0.0   ;;  %vm238_vm1 = vmmov 0   ;;  %v239_v2 = vmov 0   ;;  %s303_s1 = inlined_call_operand.vmem [shape: bf16[128,32], index: 1, kind: input, shape index: {}]   ;;  %s304_s2 = inlined_call_operand.vmem [shape: f32[16,1], index: 2, kind: input, shape index: {}]   ;;  %s305_s0 = inlined_call_operand.vmem [shape: bf16[16,128], index: 0, kind: input, shape index: {}]   ;;  %s306_s3 = inlined_call_operand.vmem [shape: bf16[16,32], index: 3, kind: output, shape index: {}]  }
   0x1   :  { %204 = vmatprep.subr.bf16.mxu0 %v237_v0  ;;  %v228_v1 = vld [vmem:[%s303_s1] sm:$0xff]   ;;  %220 = vmatprep.mubr.msk.bf16.mxu0 %vm238_vm1, %v237_v0  ;;  %20 = vst.msk [vmem:[#allocation2] sm:$0xff] %vm19_vm0, %v237_v0  ;;  %21 = vst.msk [vmem:[#allocation2 + $0x8] sm:$0xff] %vm19_vm0, %v237_v0  ;;  %v229_v3 = vld [vmem:[%s303_s1 + $0x8] sm:$0xff]   ;;  %vm175_vm3 = vcmask 257024  }
   0x2   :  { %227 = vset.pattern.permute.xlu0 %v239_v2  ;;  %205 = vmatpush3.bf16.msra.mxu0 %v228_v1  ;;  %v230_v4 = vld [vmem:[%s303_s1 + $0x10] sm:$0xff]   ;;  %v147_v5 = vld [vmem:[%s304_s2] sm:$0xff]  ;;  %v231_v6 = vld [vmem:[%s303_s1 + $0x18] sm:$0xff]  }
   0x3   :  { %206 = vmatprep.subr.bf16.mxu0 %v237_v0  ;;  %151 = vperm.xlu0 %227, %v147_v5   ;;  %v148_v7 = vld [vmem:[%s304_s2 + $0x8] sm:$0xff]  ;;  %v232_v8 = vld [vmem:[%s303_s1 + $0x20] sm:$0xff]   ;;  %v234_v10 = vld [vmem:[%s303_s1 + $0x30] sm:$0xff]  }
   0x4   :  { %v233_v9 = vld [vmem:[%s303_s1 + $0x28] sm:$0xff]   ;;  %v235_v11 = vld [vmem:[%s303_s1 + $0x38] sm:$0xff]   ;;  %v236_v12 = vld [vmem:[%s305_s0] sm:$0xff]  }
   0x6   :  { %207 = vmatpush3.bf16.msra.mxu0 %v229_v3 }
   0x7   :  { %208 = vmatprep.subr.bf16.mxu0 %v237_v0  ;;  %156 = vperm.xlu0 %227, %v148_v7  }
   0x8   :  { %v22_v13 = vld [vmem:[#allocation2] sm:$0xff]  ;;  %v23_v15 = vld [vmem:[#allocation2 + $0x8] sm:$0xff] }
   0xa   :  { %209 = vmatpush3.bf16.msra.mxu0 %v230_v4 }
   0xb   :  { %210 = vmatprep.subr.bf16.mxu0 %v237_v0 }
   0xe   :  { %211 = vmatpush3.bf16.msra.mxu0 %v231_v6 }
   0xf   :  { %212 = vmatprep.subr.bf16.mxu0 %v237_v0 }
  0x12   :  { %213 = vmatpush3.bf16.msra.mxu0 %v232_v8 }
  0x13   :  { %214 = vmatprep.subr.bf16.mxu0 %v237_v0 }
  0x16   :  { %215 = vmatpush3.bf16.msra.mxu0 %v233_v9 }
  0x17   :  { %216 = vmatprep.subr.bf16.mxu0 %v237_v0 }
  0x1a   :  { %217 = vmatpush3.bf16.msra.mxu0 %v234_v10 }
  0x1b   :  { %218 = vmatprep.subr.bf16.mxu0 %v237_v0 }
  0x1e   :  { %219 = vmatpush3.bf16.msra.mxu0 %v235_v11 }
  0x21   :  { %221 = vmatmul.mubr.bf16.vlgmr.msra.gmra.mrb[0].mxu0 %v236_v12 }
  0x82   :  { %v152_v21 = vpop.permute.xlu0 %151 }
  0x86   :  { %v157_v24 = vpop.permute.xlu0 %156 }
  0xf4   :  { %v130_v14 = vpop.f32.mrb[0].mxu0 }
  0xf5   :  { %v137_v16 = vadd.f32 %v130_v14, %v22_v13  ;;  %v222_v17 = vpop.f32.mrb[1].mxu0 }
  0xf6   :  { %v133_v18 = vpop.f32.mrb[2].mxu0 }
  0xf7   :  { %140 = vst.msk [vmem:[#allocation2] sm:$0xff] %vm19_vm0, %v137_v16  ;;  %v138_v19 = vadd.f32 %v133_v18, %v23_v15  ;;  %v223_v20 = vpop.f32.mrb[3].mxu0 }
  0xf9   :  { %141 = vst.msk [vmem:[#allocation2 + $0x8] sm:$0xff] %vm19_vm0, %v138_v19 }
  0xfe   :  { %v145_v22 = vld [vmem:[#allocation2] sm:$0xff] }
  0xff   :  { %v159_v23 = vadd.f32 %v152_v21, %v145_v22 }
 0x100   :  { %v146_v25 = vld [vmem:[#allocation2 + $0x8] sm:$0xff] }
 0x101   :  { %vm161_vm2 = vcmp.ge.f32.partialorder %v159_v23, 0.0  ;;  %v163_v26 = vmul.f32 0.01, %v159_v23  ;;  %v160_v27 = vadd.f32 %v157_v24, %v146_v25 }
 0x103   :  { %v165_v28 = vsel %vm161_vm2, %v159_v23, %v163_v26  ;;  %vm162_vm4 = vcmp.ge.f32.partialorder %v160_v27, 0.0  ;;  %v164_v29 = vmul.f32 0.01, %v160_v27 }
 0x104   :  { %v193_v30 = vpack.c.bf16 %v165_v28, %v165_v28 }
 0x105   :  { %v166_v31 = vsel %vm162_vm4, %v160_v27, %v164_v29 }
 0x106   :  { %176 = vst.msk [vmem:[%s306_s3] sm:$0xf] %vm175_vm3, %v193_v30  ;;  %v194_v32 = vpack.c.bf16 %v166_v31, %v166_v31 }
 0x108   :  { %177 = vst.msk [vmem:[%s306_s3 + $0x4] sm:$0xf] %vm175_vm3, %v194_v32 }

// kernel: discriminator_forward.5
= control target key start
LH: loop header
LB: loop body
LE: loop exit
PB: predicated region body
PF: predicated region fallthrough
CT: control target
= control target key end

     0   :  { %10 = vsyncpa [#allocation3], 0  ;;  %vm47_vm0 = vcmask 125952   ;;  %vm109_vm1 = vcmask 126977   ;;  %vm195_vm2 = vcmask 128002   ;;  %vm782_vm3 = vcmask 1041409   ;;  %s3172_s0 = inlined_call_operand.vmem [shape: bf16[2,6,6,16], index: 0, kind: input, shape index: {}]   ;;  %s3173_s1 = inlined_call_operand.vmem [shape: f32[9,16], index: 1, kind: input, shape index: {}]   ;;  %s3174_s2 = inlined_call_operand.vmem [shape: f32[16,16,8], index: 2, kind: input, shape index: {}]   ;;  %s3175_s3 = inlined_call_operand.hbm [shape: f32[2,4,4], index: 3, kind: output, shape index: {0}]   ;;  %s3176_s4 = inlined_call_operand.hbm [shape: f32[2,8], index: 4, kind: output, shape index: {1}]  }
   0x1   :  { %v20_v0 = vld [vmem:[%s3172_s0 + $0x8] sm:$0x3]  ;;  %v2094_v1 = vld [vmem:[%s3173_s1] ss:$0 sm:$0xff]  ;;  %v21_v4 = vld [vmem:[%s3172_s0 + $0xc] sm:$0x3] }
   0x2   :  { %v28_v2 = vunpack.c.l.bf16 %v20_v0  ;;  %v18_v3 = vld [vmem:[%s3172_s0] sm:$0x3]  ;;  %v19_v5 = vld [vmem:[%s3172_s0 + $0x4] sm:$0x3]  ;;  %v29_v7 = vunpack.c.l.bf16 %v21_v4  ;;  %v23_v9 = vld [vmem:[%s3172_s0 + $0x1c] sm:$0x3] }
   0x3   :  { %v26_v6 = vunpack.c.l.bf16 %v18_v3  ;;  %v27_v8 = vunpack.c.l.bf16 %v19_v5  ;;  %v22_v10 = vld [vmem:[%s3172_s0 + $0x18] sm:$0x3]  ;;  %v31_v12 = vunpack.c.l.bf16 %v23_v9  ;;  %v25_v17 = vld [vmem:[%s3172_s0 + $0x24] sm:$0x3]  ;;  %v24_v19 = vld [vmem:[%s3172_s0 + $0x20] sm:$0x3] }
   0x4   :  { %v41_v11 = vmul.f32 %v2094_v1, %v28_v2  ;;  %v42_v14 = vmul.f32 %v2094_v1, %v29_v7  ;;  %v30_v16 = vunpack.c.l.bf16 %v22_v10  ;;  %v33_v23 = vunpack.c.l.bf16 %v25_v17  ;;  %v81_v27 = vld [vmem:[%s3172_s0 + $0x4] sm:$0x7]  ;;  %v80_v28 = vld [vmem:[%s3172_s0] sm:$0x7]  ;;  %v83_v36 = vld [vmem:[%s3172_s0 + $0xc] sm:$0x7] }
   0x5   :  { %v39_v13 = vmul.f32 %v2094_v1, %v26_v6  ;;  %v40_v15 = vmul.f32 %v2094_v1, %v27_v8  ;;  %v44_v22 = vmul.f32 %v2094_v1, %v31_v12  ;;  %v32_v26 = vunpack.c.l.bf16 %v24_v19  ;;  %v2095_v34 = vld [vmem:[%s3173_s1 + $0x1] ss:$0 sm:$0xff]  ;;  %v82_v37 = vld [vmem:[%s3172_s0 + $0x8] sm:$0x7]  ;;  %v85_v44 = vld [vmem:[%s3172_s0 + $0x1c] sm:$0x7] }
   0x6   :  { %v54_v18 = vsel %vm47_vm0, %v41_v11, 0.0  ;;  %v57_v21 = vsel %vm47_vm0, %v42_v14, 0.0  ;;  %v43_v25 = vmul.f32 %v2094_v1, %v30_v16  ;;  %v46_v30 = vmul.f32 %v2094_v1, %v33_v23  ;;  %v84_v45 = vld [vmem:[%s3172_s0 + $0x18] sm:$0x7]  ;;  %v87_v52 = vld [vmem:[%s3172_s0 + $0x24] sm:$0x7] }
   0x7   :  { %55 = vadd.xlane.f32.xlu1 %v54_v18  ;;  %v48_v20 = vsel %vm47_vm0, %v39_v13, 0.0  ;;  %v51_v24 = vsel %vm47_vm0, %v40_v15, 0.0  ;;  %v63_v29 = vsel %vm47_vm0, %v44_v22, 0.0  ;;  %v89_v31 = vunpack.c.l.bf16 %v81_v27  ;;  %v86_v53 = vld [vmem:[%s3172_s0 + $0x20] sm:$0x7]  ;;  %v2152_v22 = vld [vmem:[%s3174_s2 + $0x18] sm:$0xff] }
   0x8   :  { %49 = vadd.xlane.f32.xlu0 %v48_v20  ;;  %v60_v32 = vsel %vm47_vm0, %v43_v25, 0.0  ;;  %v45_v33 = vmul.f32 %v2094_v1, %v32_v26  ;;  %v88_v35 = vunpack.c.l.bf16 %v80_v28  ;;  %v69_v38 = vsel %vm47_vm0, %v46_v30, 0.0  ;;  %v167_v60 = vld [vmem:[%s3172_s0 + $0x4] sm:$0x6]  ;;  %v166_v61 = vld [vmem:[%s3172_s0] sm:$0x6] }
   0x9   :  { %v102_v39 = vmul.f32 %v2095_v34, %v89_v31  ;;  %v91_v40 = vunpack.c.l.bf16 %v83_v36  ;;  %v90_v43 = vunpack.c.l.bf16 %v82_v37  ;;  %v93_v48 = vunpack.c.l.bf16 %v85_v44  ;;  %v2096_v3 = vld [vmem:[%s3173_s1 + $0x2] ss:$0 sm:$0xff]  ;;  %v171_v5 = vld [vmem:[%s3172_s0 + $0x1c] sm:$0x6]  ;;  %v170_v6 = vld [vmem:[%s3172_s0 + $0x18] sm:$0x6] }
   0xa   :  { %v66_v41 = vsel %vm47_vm0, %v45_v33, 0.0  ;;  %v101_v42 = vmul.f32 %v2095_v34, %v88_v35  ;;  %v92_v51 = vunpack.c.l.bf16 %v84_v45  ;;  %v95_v56 = vunpack.c.l.bf16 %v87_v52  ;;  %v172_v10 = vld [vmem:[%s3172_s0 + $0x20] sm:$0x6]  ;;  %v168_v11 = vld [vmem:[%s3172_s0 + $0x8] sm:$0x6] }
   0xb   :  { %58 = vadd.xlane.f32.xlu1 %v57_v21  ;;  %v113_v46 = vsel %vm109_vm1, %v102_v39, 0.0  ;;  %v104_v47 = vmul.f32 %v2095_v34, %v91_v40  ;;  %v103_v50 = vmul.f32 %v2095_v34, %v90_v43  ;;  %v106_v55 = vmul.f32 %v2095_v34, %v93_v48  ;;  %v173_v17 = vld [vmem:[%s3172_s0 + $0x24] sm:$0x6]  ;;  %v169_v20 = vld [vmem:[%s3172_s0 + $0xc] sm:$0x6]  ;;  %v2151_v21 = vld [vmem:[%s3174_s2 + $0x10] sm:$0xff] }
   0xc   :  { %52 = vadd.xlane.f32.xlu0 %v51_v24  ;;  %v110_v49 = vsel %vm109_vm1, %v101_v42, 0.0  ;;  %v105_v58 = vmul.f32 %v2095_v34, %v92_v51  ;;  %v94_v59 = vunpack.c.l.bf16 %v86_v53  ;;  %v108_v63 = vmul.f32 %v2095_v34, %v95_v56  ;;  %v2106_v25 = vld [vmem:[%s3172_s0 + $0x4] sm:$0x7]  ;;  %v2174_v27 = vld [vmem:[%s3174_s2 + $0x88] sm:$0xff] }
   0xd   :  { %v119_v54 = vsel %vm109_vm1, %v104_v47, 0.0  ;;  %v116_v57 = vsel %vm109_vm1, %v103_v50, 0.0  ;;  %v125_v62 = vsel %vm109_vm1, %v106_v55, 0.0  ;;  %v175_v0 = vunpack.c.l.bf16 %v167_v60  ;;  %v2173_v26 = vld [vmem:[%s3174_s2 + $0x80] sm:$0xff]  ;;  %v2108_v33 = vld [vmem:[%s3172_s0 + $0xc] sm:$0x7] }
   0xe   :  { %v122_v1 = vsel %vm109_vm1, %v105_v58, 0.0  ;;  %v107_v2 = vmul.f32 %v2095_v34, %v94_v59  ;;  %v174_v4 = vunpack.c.l.bf16 %v166_v61  ;;  %v131_v7 = vsel %vm109_vm1, %v108_v63, 0.0  ;;  %v2098_v35 = vld [vmem:[%s3172_s0 + $0x8] sm:$0x3]  ;;  %v796_v40 = vld [vmem:[%s3174_s2] sm:$0xff]  ;;  %v2177_v50 = vld [vmem:[%s3174_s2 + $0x98] sm:$0xff] }
   0xf   :  { %64 = vadd.xlane.f32.xlu1 %v63_v29  ;;  %v188_v8 = vmul.f32 %v2096_v3, %v175_v0  ;;  %v179_v9 = vunpack.c.l.bf16 %v171_v5  ;;  %v178_v14 = vunpack.c.l.bf16 %v170_v6  ;;  %v180_v15 = vunpack.c.l.bf16 %v172_v10  ;;  %v2110_v29 = vld [vmem:[%s3172_s0 + $0x1c] sm:$0x7]  ;;  %v2112_v43 = vld [vmem:[%s3172_s0 + $0x24] sm:$0x7]  ;;  %v797_v44 = vld [vmem:[%s3174_s2 + $0x8] sm:$0xff] }
  0x10   :  { %61 = vadd.xlane.f32.xlu0 %v60_v32  ;;  %v128_v12 = vsel %vm109_vm1, %v107_v2, 0.0  ;;  %v187_v13 = vmul.f32 %v2096_v3, %v174_v4  ;;  %v176_v16 = vunpack.c.l.bf16 %v168_v11  ;;  %v181_v28 = vunpack.c.l.bf16 %v173_v17 }
  0x11   :  { %v199_v18 = vsel %vm195_vm2, %v188_v8, 0.0  ;;  %v192_v19 = vmul.f32 %v2096_v3, %v179_v9  ;;  %v191_v24 = vmul.f32 %v2096_v3, %v178_v14  ;;  %v193_v30 = vmul.f32 %v2096_v3, %v180_v15 }
  0x12   :  { %v196_v23 = vsel %vm195_vm2, %v187_v13, 0.0  ;;  %v189_v31 = vmul.f32 %v2096_v3, %v176_v16  ;;  %v177_v32 = vunpack.c.l.bf16 %v169_v20  ;;  %v2649_v36 = vunpack.c.l.bf16 %v2106_v25 }
  0x13   :  { %70 = vadd.xlane.f32.xlu1 %v69_v38  ;;  %v211_v34 = vsel %vm195_vm2, %v192_v19, 0.0  ;;  %v2492_v37 = vmov 0.0|0.0   ;;  %v2358_v38 = vpack.c.bf16 %v2152_v22, %v2151_v21  ;;  %v2382_v39 = vpack.c.bf16 %v2174_v27, %v2173_v26 }
  0x14   :  { %67 = vadd.xlane.f32.xlu0 %v66_v41  ;;  %2357 = vmatprep.subr.bf16.mxu1 %v2492_v37  ;;  %v208_v41 = vsel %vm195_vm2, %v191_v24, 0.0  ;;  %v2656_v42 = vunpack.c.l.bf16 %v2110_v29  ;;  %v194_v45 = vmul.f32 %v2096_v3, %v181_v28  ;;  %v2668_v47 = vunpack.c.l.bf16 %v2108_v33 }
  0x15   :  { %2381 = vmatprep.subr.bf16.mxu0 %v2492_v37  ;;  %2359 = vmatpush3.bf16.msra.mxu1 %v2358_v38  ;;  %v803_v48 = vrot.slane %v2649_v36, 2  ;;  %v214_v51 = vsel %vm195_vm2, %v193_v30, 0.0  ;;  %v190_v52 = vmul.f32 %v2096_v3, %v177_v32  ;;  %vm2493_vm4 = vmmov 0  }
  0x16   :  { %2383 = vmatpush3.bf16.msra.mxu0 %v2382_v39  ;;  %v2494_v53 = vmov 0.0   ;;  %vm806_vm5 = vcmask 130048   ;;  %v202_v55 = vsel %vm195_vm2, %v189_v31, 0.0  ;;  %v262_v56 = vunpack.c.l.bf16 %v2098_v35 }
  0x17   :  { %114 = vadd.xlane.f32.xlu1 %v113_v46  ;;  %v2097_v46 = vld [vmem:[%s3172_s0 + $0x4] sm:$0x3]  ;;  %2249 = vmatprep.mubr.msk.f32.mxu1 %vm2493_vm4, %v2494_v53  ;;  %v1433_v58 = vrot.slane %v2668_v47, 1 }
  0x18   :  { %111 = vadd.xlane.f32.xlu0 %v110_v49  ;;  %v2176_v49 = vld [vmem:[%s3174_s2 + $0x90] sm:$0xff]  ;;  %2305 = vmatprep.mubr.msk.f32.mxu0 %vm2493_vm4, %v2494_v53 }
  0x1b   :  { %120 = vadd.xlane.f32.xlu1 %v119_v54  ;;  %v804_v54 = vrot.slane %v2656_v42, 1 }
  0x1c   :  { %117 = vadd.xlane.f32.xlu0 %v116_v57  ;;  %v2682_v57 = vunpack.c.l.bf16 %v2112_v43 }
  0x1f   :  { %126 = vadd.xlane.f32.xlu1 %v125_v62 }
  0x20   :  { %123 = vadd.xlane.f32.xlu0 %v122_v1 }
  0x23   :  { %132 = vadd.xlane.f32.xlu1 %v131_v7 }
  0x24   :  { %129 = vadd.xlane.f32.xlu0 %v128_v12 }
  0x27   :  { %200 = vadd.xlane.f32.xlu1 %v199_v18 }
  0x28   :  { %197 = vadd.xlane.f32.xlu0 %v196_v23 }
  0x2b   :  { %212 = vadd.xlane.f32.xlu1 %v211_v34 }
  0x2c   :  { %209 = vadd.xlane.f32.xlu0 %v208_v41 }
  0x2d   :  { %11 = vsyncpa [#allocation5], 0  ;;  %v2690_v59 = vld [vmem:[%s3173_s1 + $0x3] ss:$0 sm:$0xff]  ;;  %v261_v60 = vunpack.c.l.bf16 %v2097_v46  ;;  %v2102_v61 = vld [vmem:[%s3172_s0 + $0x20] sm:$0x3]  ;;  %v805_v62 = vsel %vm782_vm3, %v804_v54, %v803_v48  ;;  %2360 = vmatprep.subr.bf16.mxu1 %v2492_v37  ;;  %2384 = vmatprep.subr.bf16.mxu0 %v2492_v37  ;;  %v2361_v63 = vpack.c.bf16 %v797_v44, %v796_v40  ;;  %v2385_v0 = vpack.c.bf16 %v2177_v50, %v2176_v49 }
  0x2e   :  { %v2101_v1 = vld [vmem:[%s3172_s0 + $0x1c] sm:$0x3]  ;;  %2250 = vmatmul.mubr.msk.f32.vlgmr.msra.gmra.mrb[0].mxu1 %vm806_vm5, %v805_v62  ;;  %v1434_v2 = vsel %vm782_vm3, %v2682_v57, %v1433_v58  ;;  %v217_v3 = vsel %vm195_vm2, %v194_v45, 0.0  ;;  %v879_v4 = vrot.slane %v2649_v36, 1  ;;  %v275_v5 = vmul.f32 %v2690_v59, %v262_v56  ;;  %v2107_v7 = vld [vmem:[%s3172_s0 + $0x8] sm:$0x7] }
  0x2f   :  { %215 = vadd.xlane.f32.xlu1 %v214_v51  ;;  %2306 = vmatmul.mubr.msk.f32.vlgmr.msra.gmra.mrb[0].mxu0 %vm806_vm5, %v1434_v2  ;;  %v266_v6 = vunpack.c.l.bf16 %v2102_v61  ;;  %v1511_v8 = vrot.slane %v2668_v47, 2  ;;  %v1512_v9 = vrot.slane %v2682_v57, 1  ;;  %v205_v10 = vsel %vm195_vm2, %v190_v52, 0.0  ;;  %v2155_v13 = vld [vmem:[%s3174_s2 + $0x20] sm:$0xff]  ;;  %v2156_v14 = vld [vmem:[%s3174_s2 + $0x28] sm:$0xff]  ;;  %v2158_v40 = vld [vmem:[%s3174_s2 + $0x30] sm:$0xff] }
  0x30   :  { %203 = vadd.xlane.f32.xlu0 %v202_v55  ;;  %2362 = vmatpush3.bf16.msra.mxu1 %v2361_v63  ;;  %v274_v11 = vmul.f32 %v2690_v59, %v261_v60  ;;  %v265_v12 = vunpack.c.l.bf16 %v2101_v1  ;;  %v2179_v15 = vld [vmem:[%s3174_s2 + $0xa0] sm:$0xff]  ;;  %v2180_v16 = vld [vmem:[%s3174_s2 + $0xa8] sm:$0xff]  ;;  %v2732_v17 = vunpack.c.l.bf16 %v2107_v7  ;;  %v880_v18 = vsel %vm782_vm3, %v2656_v42, %v879_v4  ;;  %v2159_v41 = vld [vmem:[%s3174_s2 + $0x38] sm:$0xff] }
  0x31   :  { %2386 = vmatpush3.bf16.msra.mxu0 %v2385_v0  ;;  %2256 = vmatprep.mubr.msk.f32.mxu1 %vm2493_vm4, %v2494_v53  ;;  %v285_v19 = vsel %vm47_vm0, %v275_v5, 0.0  ;;  %v279_v20 = vmul.f32 %v2690_v59, %v266_v6  ;;  %v2111_v21 = vld [vmem:[%s3172_s0 + $0x20] sm:$0x7]  ;;  %v1513_v22 = vsel %vm782_vm3, %v1512_v9, %v1511_v8  ;;  %v2364_v23 = vpack.c.bf16 %v2156_v14, %v2155_v13  ;;  %v2748_v26 = vld [vmem:[%s3173_s1 + $0x4] ss:$0 sm:$0xff]  ;;  %v2182_v44 = vld [vmem:[%s3174_s2 + $0xb0] sm:$0xff] }
  0x32   :  { %2312 = vmatprep.mubr.msk.f32.mxu0 %vm2493_vm4, %v2494_v53  ;;  %2363 = vmatprep.subr.bf16.mxu1 %v2492_v37  ;;  %v282_v24 = vsel %vm47_vm0, %v274_v11, 0.0  ;;  %v278_v25 = vmul.f32 %v2690_v59, %v265_v12  ;;  %v2388_v27 = vpack.c.bf16 %v2180_v16, %v2179_v15  ;;  %v2751_v28 = vunpack.c.l.bf16 %v2111_v21  ;;  %v2103_v39 = vld [vmem:[%s3172_s0 + $0x24] sm:$0x3]  ;;  %v2099_v43 = vld [vmem:[%s3172_s0 + $0xc] sm:$0x3]  ;;  %v2183_v45 = vld [vmem:[%s3174_s2 + $0xb8] sm:$0xff] }
  0x33   :  { %218 = vadd.xlane.f32.xlu1 %v217_v3  ;;  %2387 = vmatprep.subr.bf16.mxu0 %v2492_v37  ;;  %v956_v29 = vrot.slane %v2649_v36, 3  ;;  %v957_v30 = vrot.slane %v2656_v42, 2  ;;  %v297_v31 = vsel %vm47_vm0, %v279_v20, 0.0  ;;  %v336_v32 = vmul.f32 %v2748_v26, %v2732_v17  ;;  %v2104_v0 = vld [vmem:[%s3172_s0 + $0x28] sm:$0x3]  ;;  %v2185_v6 = vld [vmem:[%s3174_s2 + $0xc0] sm:$0xff] }
  0x34   :  { %206 = vadd.xlane.f32.xlu0 %v205_v10  ;;  %v1590_v33 = vrot.slane %v2668_v47, 3  ;;  %v1591_v34 = vrot.slane %v2682_v57, 2  ;;  %v294_v35 = vsel %vm47_vm0, %v278_v25, 0.0  ;;  %v335_v38 = vmul.f32 %v2748_v26, %v2649_v36  ;;  %v2162_v4 = vld [vmem:[%s3174_s2 + $0x48] sm:$0xff]  ;;  %v2100_v5 = vld [vmem:[%s3172_s0 + $0x10] sm:$0x3] }
  0x35   :  { %v340_v46 = vmul.f32 %v2748_v26, %v2751_v28  ;;  %v958_v48 = vsel %vm782_vm3, %v957_v30, %v956_v29  ;;  %v346_v49 = vsel %vm109_vm1, %v336_v32, 0.0  ;;  %v267_v50 = vunpack.c.l.bf16 %v2103_v39  ;;  %v2186_v7 = vld [vmem:[%s3174_s2 + $0xc8] sm:$0xff]  ;;  %v2109_v9 = vld [vmem:[%s3172_s0 + $0x10] sm:$0x7] }
  0x36   :  { %2257 = vmatmul.mubr.msk.f32.vlgmr.msra.gmra.mrb[0].mxu1 %vm806_vm5, %v880_v18  ;;  %v1592_v51 = vsel %vm782_vm3, %v1591_v34, %v1590_v33  ;;  %v2367_v52 = vpack.c.bf16 %v2159_v41, %v2158_v40  ;;  %v343_v54 = vsel %vm109_vm1, %v335_v38, 0.0  ;;  %v339_v55 = vmul.f32 %v2748_v26, %v2656_v42  ;;  %v2113_v13 = vld [vmem:[%s3172_s0 + $0x28] sm:$0x7]  ;;  %v2164_v30 = vld [vmem:[%s3174_s2 + $0x50] sm:$0xff]  ;;  %v2189_v33 = vld [vmem:[%s3174_s2 + $0xd8] sm:$0xff] }
  0x37   :  { %286 = vadd.xlane.f32.xlu1 %v285_v19  ;;  %2313 = vmatmul.mubr.msk.f32.vlgmr.msra.gmra.mrb[0].mxu0 %vm806_vm5, %v1513_v22  ;;  %v263_v56 = vunpack.c.l.bf16 %v2099_v43  ;;  %v2391_v58 = vpack.c.bf16 %v2183_v45, %v2182_v44  ;;  %v1035_v60 = vrot.slane %v2649_v36, 4  ;;  %v1036_v61 = vrot.slane %v2656_v42, 3  ;;  %v2161_v42 = vld [vmem:[%s3174_s2 + $0x40] sm:$0xff]  ;;  %v2116_v29 = vld [vmem:[%s3172_s0 + $0x8] sm:$0x6]  ;;  %v2188_v32 = vld [vmem:[%s3174_s2 + $0xd0] sm:$0xff] }
  0x38   :  { %283 = vadd.xlane.f32.xlu0 %v282_v24  ;;  %2365 = vmatpush3.bf16.msra.mxu1 %v2364_v23  ;;  %v358_v62 = vsel %vm109_vm1, %v340_v46, 0.0  ;;  %v280_v63 = vmul.f32 %v2690_v59, %v267_v50  ;;  %v1669_v1 = vrot.slane %v2668_v47, 4  ;;  %v1670_v2 = vrot.slane %v2682_v57, 3  ;;  %v2893_v45 = vld [vmem:[%s3173_s1 + $0x5] ss:$0 sm:$0xff] }
  0x39   :  { %2389 = vmatpush3.bf16.msra.mxu0 %v2388_v27  ;;  %2263 = vmatprep.mubr.msk.f32.mxu1 %vm2493_vm4, %v2494_v53  ;;  %v355_v3 = vsel %vm109_vm1, %v339_v55, 0.0  ;;  %v276_v36 = vmul.f32 %v2690_v59, %v263_v56  ;;  %v268_v8 = vunpack.c.l.bf16 %v2104_v0  ;;  %v1037_v10 = vsel %vm782_vm3, %v1036_v61, %v1035_v60  ;;  %v2119_v50 = vld [vmem:[%s3172_s0 + $0x1c] sm:$0x6]  ;;  %v2121_v56 = vld [vmem:[%s3172_s0 + $0x24] sm:$0x6] }
  0x3a   :  { %2319 = vmatprep.mubr.msk.f32.mxu0 %vm2493_vm4, %v2494_v53  ;;  %2366 = vmatprep.subr.bf16.mxu1 %v2492_v37  ;;  %v300_v11 = vsel %vm47_vm0, %v280_v63, 0.0  ;;  %v341_v12 = vmul.f32 %v2748_v26, %v2682_v57  ;;  %v1671_v14 = vsel %vm782_vm3, %v1670_v2, %v1669_v1  ;;  %v2370_v15 = vpack.c.bf16 %v2162_v4, %v2161_v42  ;;  %v2167_v0 = vld [vmem:[%s3174_s2 + $0x60] sm:$0xff]  ;;  %v2168_v1 = vld [vmem:[%s3174_s2 + $0x68] sm:$0xff] }
  0x3b   :  { %298 = vadd.xlane.f32.xlu1 %v297_v31  ;;  %2390 = vmatprep.subr.bf16.mxu0 %v2492_v37  ;;  %v288_v16 = vsel %vm47_vm0, %v276_v36, 0.0  ;;  %v337_v18 = vmul.f32 %v2748_v26, %v2668_v47  ;;  %v264_v19 = vunpack.c.l.bf16 %v2100_v5  ;;  %v2394_v20 = vpack.c.bf16 %v2186_v7, %v2185_v6  ;;  %v2165_v31 = vld [vmem:[%s3174_s2 + $0x58] sm:$0xff]  ;;  %v2117_v2 = vld [vmem:[%s3172_s0 + $0xc] sm:$0x6]  ;;  %v2122_v7 = vld [vmem:[%s3172_s0 + $0x28] sm:$0x6] }
  0x3c   :  { %295 = vadd.xlane.f32.xlu0 %v294_v35  ;;  %v2844_v21 = vunpack.c.l.bf16 %v2109_v9  ;;  %v2847_v57 = vunpack.c.l.bf16 %v2113_v13  ;;  %v1116_v22 = vrot.slane %v2732_v17, 1  ;;  %v361_v23 = vsel %vm109_vm1, %v341_v12, 0.0  ;;  %v2192_v36 = vld [vmem:[%s3174_s2 + $0xe8] sm:$0xff] }
  0x3d   :  { %v281_v24 = vmul.f32 %v2690_v59, %v268_v8  ;;  %v349_v25 = vsel %vm109_vm1, %v337_v18, 0.0  ;;  %v277_v27 = vmul.f32 %v2690_v59, %v264_v19  ;;  %v2115_v59 = vld [vmem:[%s3172_s0 + $0x4] sm:$0x6]  ;;  %v408_v39 = vunpack.c.l.bf16 %v2116_v29  ;;  %v2170_v29 = vld [vmem:[%s3174_s2 + $0x70] sm:$0xff] }
  0x3e   :  { %2264 = vmatmul.mubr.msk.f32.vlgmr.msra.gmra.mrb[0].mxu1 %vm806_vm5, %v958_v48  ;;  %v1750_v47 = vrot.slane %v2844_v21, 1  ;;  %v342_v34 = vmul.f32 %v2748_v26, %v2847_v57  ;;  %v1117_v35 = vsel %vm782_vm3, %v2751_v28, %v1116_v22  ;;  %v2373_v41 = vpack.c.bf16 %v2165_v31, %v2164_v30  ;;  %v2120_v48 = vld [vmem:[%s3172_s0 + $0x20] sm:$0x6]  ;;  %v2171_v30 = vld [vmem:[%s3174_s2 + $0x78] sm:$0xff]  ;;  %v2124_v31 = vld [vmem:[%s3172_s0 + $0x8] sm:$0x3] }
  0x3f   :  { %347 = vadd.xlane.f32.xlu1 %v346_v49  ;;  %2320 = vmatmul.mubr.msk.f32.vlgmr.msra.gmra.mrb[0].mxu0 %vm806_vm5, %v1592_v51  ;;  %v303_v38 = vsel %vm47_vm0, %v281_v24, 0.0  ;;  %v291_v43 = vsel %vm47_vm0, %v277_v27, 0.0  ;;  %v338_v44 = vmul.f32 %v2748_v26, %v2844_v21  ;;  %v407_v46 = vunpack.c.l.bf16 %v2115_v59  ;;  %v2125_v27 = vld [vmem:[%s3172_s0 + $0xc] sm:$0x3]  ;;  %v2194_v59 = vld [vmem:[%s3174_s2 + $0xf0] sm:$0xff] }
  0x40   :  { %344 = vadd.xlane.f32.xlu0 %v343_v54  ;;  %2368 = vmatpush3.bf16.msra.mxu1 %v2367_v52  ;;  %v1751_v40 = vsel %vm782_vm3, %v2847_v57, %v1750_v47  ;;  %v2397_v49 = vpack.c.bf16 %v2189_v33, %v2188_v32  ;;  %v364_v26 = vsel %vm109_vm1, %v342_v34, 0.0  ;;  %v1194_v51 = vrot.slane %v2732_v17, 2  ;;  %v2195_v32 = vld [vmem:[%s3174_s2 + $0xf8] sm:$0xff] }
  0x41   :  { %2392 = vmatpush3.bf16.msra.mxu0 %v2391_v58  ;;  %2270 = vmatprep.mubr.msk.f32.mxu1 %vm2493_vm4, %v2494_v53  ;;  %v1195_v52 = vrot.slane %v2751_v28, 1  ;;  %v421_v54 = vmul.f32 %v2893_v45, %v408_v39  ;;  %v412_v55 = vunpack.c.l.bf16 %v2120_v48  ;;  %v1828_v58 = vrot.slane %v2844_v21, 2 }
  0x42   :  { %2326 = vmatprep.mubr.msk.f32.mxu0 %vm2493_vm4, %v2494_v53  ;;  %2369 = vmatprep.subr.bf16.mxu1 %v2492_v37  ;;  %v1829_v60 = vrot.slane %v2847_v57, 1  ;;  %v352_v61 = vsel %vm109_vm1, %v338_v44, 0.0  ;;  %v411_v63 = vunpack.c.l.bf16 %v2119_v50  ;;  %v413_v42 = vunpack.c.l.bf16 %v2121_v56  ;;  %v2990_v44 = vld [vmem:[%s3173_s1 + $0x6] ss:$0 sm:$0xff] }
  0x43   :  { %359 = vadd.xlane.f32.xlu1 %v358_v62  ;;  %2393 = vmatprep.subr.bf16.mxu0 %v2492_v37  ;;  %v420_v62 = vmul.f32 %v2893_v45, %v407_v46  ;;  %v1196_v4 = vsel %vm782_vm3, %v1195_v52, %v1194_v51  ;;  %v431_v5 = vsel %vm195_vm2, %v421_v54, 0.0  ;;  %v425_v6 = vmul.f32 %v2893_v45, %v412_v55 }
  0x44   :  { %356 = vadd.xlane.f32.xlu0 %v355_v3  ;;  %v2191_v3 = vld [vmem:[%s3174_s2 + $0xe0] sm:$0xff]  ;;  %v1830_v8 = vsel %vm782_vm3, %v1829_v60, %v1828_v58  ;;  %v2376_v9 = vpack.c.bf16 %v2168_v1, %v2167_v0  ;;  %v409_v12 = vunpack.c.l.bf16 %v2117_v2  ;;  %v1274_v18 = vrot.slane %v2751_v28, 2 }
  0x45   :  { %v2400_v13 = vpack.c.bf16 %v2192_v36, %v2191_v3  ;;  %v443_v19 = vsel %vm195_vm2, %v425_v6, 0.0  ;;  %v1907_v22 = vrot.slane %v2844_v21, 3  ;;  %v493_v46 = vunpack.c.l.bf16 %v2124_v31  ;;  %v2141_v2 = vld [vmem:[%s3173_s1 + $0x7] ss:$0 sm:$0xff]  ;;  %v2138_v3 = vld [vmem:[%s3172_s0 + $0x24] sm:$0x7] }
  0x46   :  { %2271 = vmatmul.mubr.msk.f32.vlgmr.msra.gmra.mrb[0].mxu1 %vm806_vm5, %v1037_v10  ;;  %v428_v10 = vsel %vm195_vm2, %v420_v62, 0.0  ;;  %v422_v47 = vmul.f32 %v2893_v45, %v409_v12  ;;  %v2403_v48 = vpack.c.bf16 %v2195_v32, %v2194_v59  ;;  %v1352_v50 = vrot.slane %v2732_v17, 4  ;;  %v2137_v36 = vld [vmem:[%s3172_s0 + $0x20] sm:$0x7] }
  0x47   :  { %301 = vadd.xlane.f32.xlu1 %v300_v11  ;;  %2327 = vmatmul.mubr.msk.f32.vlgmr.msra.gmra.mrb[0].mxu0 %vm806_vm5, %v1671_v14  ;;  %v424_v11 = vmul.f32 %v2893_v45, %v411_v63  ;;  %v2118_v14 = vld [vmem:[%s3172_s0 + $0x10] sm:$0x6]  ;;  %v1986_v54 = vrot.slane %v2844_v21, 4  ;;  %v1987_v55 = vrot.slane %v2847_v57, 3  ;;  %v506_v58 = vmul.f32 %v2990_v44, %v493_v46 }
  0x48   :  { %289 = vadd.xlane.f32.xlu0 %v288_v16  ;;  %2371 = vmatpush3.bf16.msra.mxu1 %v2370_v15  ;;  %v414_v15 = vunpack.c.l.bf16 %v2122_v7  ;;  %v1273_v16 = vrot.slane %v2732_v17, 3  ;;  %v2134_v17 = vld [vmem:[%s3172_s0 + $0xc] sm:$0x7]  ;;  %vm2062_vm6 = vcmask 58368  }
  0x49   :  { %2395 = vmatpush3.bf16.msra.mxu0 %v2394_v20  ;;  %2277 = vmatprep.mubr.msk.f32.mxu1 %vm2493_vm4, %v2494_v53  ;;  %v426_v20 = vmul.f32 %v2893_v45, %v413_v42  ;;  %v440_v24 = vsel %vm195_vm2, %v424_v11, 0.0  ;;  %v555_v62 = vunpack.c.l.bf16 %v2134_v17  ;;  %v1988_v63 = vsel %vm782_vm3, %v1987_v55, %v1986_v54  ;;  %v2147_v55 = vld [vmem:[%s3172_s0 + $0x24] sm:$0x6] }
  0x4a   :  { %2333 = vmatprep.mubr.msk.f32.mxu0 %vm2493_vm4, %v2494_v53  ;;  %2372 = vmatprep.subr.bf16.mxu1 %v2492_v37  ;;  %v427_v33 = vmul.f32 %v2893_v45, %v414_v15  ;;  %v1275_v34 = vsel %vm782_vm3, %v1274_v18, %v1273_v16  ;;  %v514_v0 = vsel %vm47_vm0, %v506_v58, 0.0  ;;  %v2139_v18 = vld [vmem:[%s3172_s0 + $0x28] sm:$0x7]  ;;  %v644_v17 = vunpack.c.l.bf16 %v2147_v55 }
  0x4b   :  { %362 = vadd.xlane.f32.xlu1 %v361_v23  ;;  %2396 = vmatprep.subr.bf16.mxu0 %v2492_v37  ;;  %v1908_v23 = vrot.slane %v2847_v57, 2 }
  0x4c   :  { %350 = vadd.xlane.f32.xlu0 %v349_v25  ;;  %v410_v25 = vunpack.c.l.bf16 %v2118_v14 }
  0x4d   :  { %v1909_v39 = vsel %vm782_vm3, %v1908_v23, %v1907_v22  ;;  %v560_v23 = vunpack.c.l.bf16 %v2139_v18 }
  0x4e   :  { %2278 = vmatmul.mubr.msk.f32.vlgmr.msra.gmra.mrb[0].mxu1 %vm806_vm5, %v1117_v35  ;;  %v446_v35 = vsel %vm195_vm2, %v426_v20, 0.0 }
  0x4f   :  { %304 = vadd.xlane.f32.xlu1 %v303_v38  ;;  %2334 = vmatmul.mubr.msk.f32.vlgmr.msra.gmra.mrb[0].mxu0 %vm806_vm5, %v1751_v40  ;;  %v494_v38 = vunpack.c.l.bf16 %v2125_v27  ;;  %v2379_v40 = vpack.c.bf16 %v2171_v30, %v2170_v29  ;;  %v2131_v27 = vld [vmem:[%s3172_s0 + $0x2c] sm:$0x3]  ;;  %v2127_v29 = vld [vmem:[%s3172_s0 + $0x14] sm:$0x3]  ;;  %v573_v31 = vmul.f32 %v2141_v2, %v560_v23 }
  0x50   :  { %292 = vadd.xlane.f32.xlu0 %v291_v43  ;;  %2374 = vmatpush3.bf16.msra.mxu1 %v2373_v41  ;;  %v434_v41 = vsel %vm195_vm2, %v422_v47, 0.0  ;;  %v423_v43 = vmul.f32 %v2893_v45, %v410_v25  ;;  %v449_v45 = vsel %vm195_vm2, %v427_v33, 0.0  ;;  %v500_v59 = vunpack.c.l.bf16 %v2131_v27 }
  0x51   :  { %2398 = vmatpush3.bf16.msra.mxu0 %v2397_v49  ;;  %2284 = vmatprep.mubr.msk.f32.mxu1 %vm2493_vm4, %v2494_v53  ;;  %v2128_v49 = vld [vmem:[%s3172_s0 + $0x20] sm:$0x3]  ;;  %v507_v51 = vmul.f32 %v2990_v44, %v494_v38  ;;  %v2136_v38 = vld [vmem:[%s3172_s0 + $0x14] sm:$0x7] }
  0x52   :  { %2340 = vmatprep.mubr.msk.f32.mxu0 %vm2493_vm4, %v2494_v53  ;;  %2375 = vmatprep.subr.bf16.mxu1 %v2492_v37  ;;  %v437_v56 = vsel %vm195_vm2, %v423_v43, 0.0  ;;  %v497_v60 = vunpack.c.l.bf16 %v2128_v49  ;;  %v2142_v49 = vld [vmem:[%s3172_s0 + $0x8] sm:$0x6] }
  0x53   :  { %365 = vadd.xlane.f32.xlu1 %v364_v26  ;;  %2399 = vmatprep.subr.bf16.mxu0 %v2492_v37  ;;  %v1353_v26 = vrot.slane %v2751_v28, 3  ;;  %v2133_v28 = vld [vmem:[%s3172_s0 + $0x8] sm:$0x7]  ;;  %v517_v57 = vsel %vm47_vm0, %v507_v51, 0.0  ;;  %v639_v54 = vunpack.c.l.bf16 %v2142_v49 }
  0x54   :  { %353 = vadd.xlane.f32.xlu0 %v352_v61  ;;  %v510_v1 = vmul.f32 %v2990_v44, %v497_v60 }
  0x55   :  { %v1354_v21 = vsel %vm782_vm3, %v1353_v26, %v1352_v50 }
  0x56   :  { %2285 = vmatmul.mubr.msk.f32.vlgmr.msra.gmra.mrb[0].mxu1 %vm806_vm5, %v1196_v4  ;;  %v568_v4 = vmul.f32 %v2141_v2, %v555_v62  ;;  %v526_v6 = vsel %vm47_vm0, %v510_v1, 0.0  ;;  %v2144_v62 = vld [vmem:[%s3172_s0 + $0x10] sm:$0x6] }
  0x57   :  { %432 = vadd.xlane.f32.xlu1 %v431_v5  ;;  %2341 = vmatmul.mubr.msk.f32.vlgmr.msra.gmra.mrb[0].mxu0 %vm806_vm5, %v1830_v8  ;;  %v559_v5 = vunpack.c.l.bf16 %v2138_v3  ;;  %v558_v8 = vunpack.c.l.bf16 %v2137_v36  ;;  %v641_v3 = vunpack.c.l.bf16 %v2144_v62  ;;  %v2149_v36 = vld [vmem:[%s3172_s0 + $0x2c] sm:$0x6] }
  0x58   :  { %429 = vadd.xlane.f32.xlu0 %v428_v10  ;;  %2377 = vmatpush3.bf16.msra.mxu1 %v2376_v9  ;;  %v2130_v9 = vld [vmem:[%s3172_s0 + $0x28] sm:$0x3]  ;;  %v2126_v10 = vld [vmem:[%s3172_s0 + $0x10] sm:$0x3]  ;;  %v578_v11 = vsel %vm109_vm1, %v568_v4, 0.0 }
  0x59   :  { %2401 = vmatpush3.bf16.msra.mxu0 %v2400_v13  ;;  %2291 = vmatprep.mubr.msk.f32.mxu1 %vm2493_vm4, %v2494_v53  ;;  %v572_v12 = vmul.f32 %v2141_v2, %v559_v5  ;;  %v499_v13 = vunpack.c.l.bf16 %v2130_v9  ;;  %v571_v15 = vmul.f32 %v2141_v2, %v558_v8  ;;  %v495_v16 = vunpack.c.l.bf16 %v2126_v10 }
  0x5a   :  { %2347 = vmatprep.mubr.msk.f32.mxu0 %vm2493_vm4, %v2494_v53  ;;  %2378 = vmatprep.subr.bf16.mxu1 %v2492_v37 }
  0x5b   :  { %444 = vadd.xlane.f32.xlu1 %v443_v19  ;;  %2402 = vmatprep.subr.bf16.mxu0 %v2492_v37  ;;  %v2129_v37 = vld [vmem:[%s3172_s0 + $0x24] sm:$0x3]  ;;  %v2135_v19 = vld [vmem:[%s3172_s0 + $0x10] sm:$0x7]  ;;  %v590_v20 = vsel %vm109_vm1, %v572_v12, 0.0  ;;  %v512_v22 = vmul.f32 %v2990_v44, %v499_v13  ;;  %v508_v47 = vmul.f32 %v2990_v44, %v495_v16 }
  0x5c   :  { %441 = vadd.xlane.f32.xlu0 %v440_v24  ;;  %v498_v52 = vunpack.c.l.bf16 %v2129_v37  ;;  %v587_v24 = vsel %vm109_vm1, %v571_v15, 0.0  ;;  %v556_v25 = vunpack.c.l.bf16 %v2135_v19  ;;  %v557_v37 = vunpack.c.l.bf16 %v2136_v38 }
  0x5d   :  { %v532_v30 = vsel %vm47_vm0, %v512_v22, 0.0  ;;  %v520_v32 = vsel %vm47_vm0, %v508_v47, 0.0  ;;  %v2495_v22 = vmov 0  }
  0x5e   :  { %2292 = vmatmul.mubr.msk.f32.vlgmr.msra.gmra.mrb[0].mxu1 %vm806_vm5, %v1275_v34  ;;  %v511_v61 = vmul.f32 %v2990_v44, %v498_v52  ;;  %v569_v33 = vmul.f32 %v2141_v2, %v556_v25  ;;  %v496_v34 = vunpack.c.l.bf16 %v2127_v29  ;;  %v570_v52 = vmul.f32 %v2141_v2, %v557_v37  ;;  %2443 = vset.pattern.permute.xlu1 %v2495_v22 }
  0x5f   :  { %447 = vadd.xlane.f32.xlu1 %v446_v35  ;;  %2348 = vmatmul.mubr.msk.f32.vlgmr.msra.gmra.mrb[0].mxu0 %vm806_vm5, %v1909_v39  ;;  %v2140_v35 = vld [vmem:[%s3172_s0 + $0x2c] sm:$0x7]  ;;  %v593_v39 = vsel %vm109_vm1, %v573_v31, 0.0 }
  0x60   :  { %435 = vadd.xlane.f32.xlu0 %v434_v41  ;;  %2380 = vmatpush3.bf16.msra.mxu1 %v2379_v40  ;;  %v529_v42 = vsel %vm47_vm0, %v511_v61, 0.0  ;;  %v513_v40 = vmul.f32 %v2990_v44, %v500_v59  ;;  %v561_v41 = vunpack.c.l.bf16 %v2140_v35  ;;  %v581_v43 = vsel %vm109_vm1, %v569_v33, 0.0  ;;  %v2148_v61 = vld [vmem:[%s3172_s0 + $0x28] sm:$0x6] }
  0x61   :  { %2404 = vmatpush3.bf16.msra.mxu0 %v2403_v48  ;;  %2298 = vmatprep.mubr.msk.f32.mxu1 %vm2493_vm4, %v2494_v53  ;;  %v509_v46 = vmul.f32 %v2990_v44, %v496_v34  ;;  %v2143_v48 = vld [vmem:[%s3172_s0 + $0xc] sm:$0x6]  ;;  %v2150_v44 = vld [vmem:[%s3173_s1 + $0x8] ss:$0 sm:$0xff]  ;;  %v645_v1 = vunpack.c.l.bf16 %v2148_v61 }
  0x62   :  { %2354 = vmatprep.mubr.msk.f32.mxu0 %vm2493_vm4, %v2494_v53  ;;  %v554_v53 = vunpack.c.l.bf16 %v2133_v28  ;;  %v574_v50 = vmul.f32 %v2141_v2, %v561_v41  ;;  %v640_v26 = vunpack.c.l.bf16 %v2143_v48  ;;  %v584_v28 = vsel %vm109_vm1, %v570_v52, 0.0  ;;  %2442 = vset.pattern.permute.xlu0 %v2495_v22 }
  0x63   :  { %450 = vadd.xlane.f32.xlu1 %v449_v45  ;;  %v535_v45 = vsel %vm47_vm0, %v513_v40, 0.0  ;;  %v523_v51 = vsel %vm47_vm0, %v509_v46, 0.0  ;;  %v658_v5 = vmul.f32 %v2150_v44, %v645_v1  ;;  %v654_v8 = vmul.f32 %v2150_v44, %v641_v3 }
  0x64   :  { %438 = vadd.xlane.f32.xlu0 %v437_v56  ;;  %v567_v7 = vmul.f32 %v2141_v2, %v554_v53  ;;  %v2146_v56 = vld [vmem:[%s3172_s0 + $0x20] sm:$0x6]  ;;  %v596_v58 = vsel %vm109_vm1, %v574_v50, 0.0  ;;  %v653_v60 = vmul.f32 %v2150_v44, %v640_v26 }
  0x65   :  { %v678_v10 = vsel %vm195_vm2, %v658_v5, 0.0  ;;  %v666_v12 = vsel %vm195_vm2, %v654_v8, 0.0 }
  0x66   :  { %2299 = vmatmul.mubr.msk.f32.vlgmr.msra.gmra.mrb[0].mxu1 %vm806_vm5, %v1354_v21  ;;  %v575_v14 = vsel %vm109_vm1, %v567_v7, 0.0  ;;  %v652_v21 = vmul.f32 %v2150_v44, %v639_v54 }
  0x67   :  { %518 = vadd.xlane.f32.xlu1 %v517_v57  ;;  %2355 = vmatmul.mubr.msk.f32.vlgmr.msra.gmra.mrb[0].mxu0 %vm806_vm5, %v1988_v63  ;;  %v643_v57 = vunpack.c.l.bf16 %v2146_v56  ;;  %v663_v63 = vsel %vm195_vm2, %v653_v60, 0.0 }
  0x68   :  { %515 = vadd.xlane.f32.xlu0 %v514_v0  ;;  %v657_v0 = vmul.f32 %v2150_v44, %v644_v17  ;;  %v660_v2 = vsel %vm195_vm2, %v652_v21, 0.0 }
  0x69   :  { %v656_v53 = vmul.f32 %v2150_v44, %v643_v57 }
  0x6a   :  { %v675_v4 = vsel %vm195_vm2, %v657_v0, 0.0 }
  0x6b   :  { %530 = vadd.xlane.f32.xlu1 %v529_v42  ;;  %v2145_v42 = vld [vmem:[%s3172_s0 + $0x14] sm:$0x6]  ;;  %v672_v7 = vsel %vm195_vm2, %v656_v53, 0.0  ;;  %s2496_s0 = smov [#allocation4]  }
  0x6c   :  { %527 = vadd.xlane.f32.xlu0 %v526_v6  ;;  %v646_v6 = vunpack.c.l.bf16 %v2149_v36  ;;  %v642_v9 = vunpack.c.l.bf16 %v2145_v42  ;;  %s2082_s30 = sshll.u32 %s2496_s0, 4  ;;  %s2083_s30 = int_to_ptr.vmem [resolvable:$true] %s2082_s30 }
  0x6d   :  { %s2444_s5 = scalar_lea.vmem %s2083_s30, 32  ;;  %p2449_p1 = scmp.lt.s32.totalorder %s2083_s30, %s2083_s30 }
  0x6e   :  { %v655_v13 = vmul.f32 %v2150_v44, %v642_v9  ;;  %p2445_p0 = scmp.ne.s32.totalorder %s2083_s30, %s2444_s5  ;;  %p2450_p2 = scmp.lt.s32.totalorder %s2444_s5, %s2444_s5 }
  0x6f   :  { %579 = vadd.xlane.f32.xlu1 %v578_v11  ;;  %v659_v11 = vmul.f32 %v2150_v44, %v646_v6 }
  0x70   :  { %576 = vadd.xlane.f32.xlu0 %v575_v14  ;;  %v669_v15 = vsel %vm195_vm2, %v655_v13, 0.0  ;;  %p2451_p3 = por %p2450_p2, %p2449_p1 }
  0x71   :  { %v681_v14 = vsel %vm195_vm2, %v659_v11, 0.0 }
  0x72   :  { %p2452_p4 = pnand %p2451_p3, %p2445_p0 }
  0x73   :  { %591 = vadd.xlane.f32.xlu1 %v590_v20 }
  0x74   :  { %588 = vadd.xlane.f32.xlu0 %v587_v24 }
  0x77   :  { %533 = vadd.xlane.f32.xlu1 %v532_v30 }
  0x78   :  { %521 = vadd.xlane.f32.xlu0 %v520_v32 }
  0x7b   :  { %594 = vadd.xlane.f32.xlu1 %v593_v39 }
  0x7c   :  { %582 = vadd.xlane.f32.xlu0 %v581_v43 }
  0x7f   :  { %536 = vadd.xlane.f32.xlu1 %v535_v45 }
  0x80   :  { %524 = vadd.xlane.f32.xlu0 %v523_v51 }
  0x83   :  { %597 = vadd.xlane.f32.xlu1 %v596_v58 }
  0x84   :  { %585 = vadd.xlane.f32.xlu0 %v584_v28 }
  0x87   :  { %664 = vadd.xlane.f32.xlu1 %v663_v63 }
  0x88   :  { %661 = vadd.xlane.f32.xlu0 %v660_v2 }
  0x8b   :  { %676 = vadd.xlane.f32.xlu1 %v675_v4 }
  0x8c   :  { %673 = vadd.xlane.f32.xlu0 %v672_v7 }
  0x8f   :  { %679 = vadd.xlane.f32.xlu1 %v678_v10 }
  0x90   :  { %667 = vadd.xlane.f32.xlu0 %v666_v12 }
  0x93   :  { %682 = vadd.xlane.f32.xlu1 %v681_v14 }
  0x94   :  { %670 = vadd.xlane.f32.xlu0 %v669_v15  ;;  %v56_v16 = vpop.xlane.xlu1 %55 }
  0x95   :  { %v50_v18 = vpop.xlane.xlu0 %49 }
  0x98   :  { %v59_v19 = vpop.xlane.xlu1 %58 }
  0x99   :  { %v53_v20 = vpop.xlane.xlu0 %52 }
  0x9c   :  { %v65_v23 = vpop.xlane.xlu1 %64 }
  0x9d   :  { %v62_v24 = vpop.xlane.xlu0 %61 }
  0xa0   :  { %v71_v47 = vpop.xlane.xlu1 %70 }
  0xa1   :  { %v68_v25 = vpop.xlane.xlu0 %67 }
  0xa4   :  { %v115_v27 = vpop.xlane.xlu1 %114 }
  0xa5   :  { %v143_v29 = vrot.slane %v115_v27, 1  ;;  %v112_v30 = vpop.xlane.xlu0 %111 }
  0xa6   :  { %v142_v31 = vrot.slane %v112_v30, 1 }
  0xa7   :  { %v159_v59 = vadd.f32 %v143_v29, %v53_v20 }
  0xa8   :  { %v158_v32 = vadd.f32 %v142_v31, %v50_v18  ;;  %v121_v33 = vpop.xlane.xlu1 %120 }
  0xa9   :  { %v145_v34 = vrot.slane %v121_v33, 1  ;;  %v118_v35 = vpop.xlane.xlu0 %117 }
  0xaa   :  { %v144_v38 = vrot.slane %v118_v35, 1 }
  0xab   :  { %v161_v39 = vadd.f32 %v145_v34, %v59_v19 }
  0xac   :  { %v160_v40 = vadd.f32 %v144_v38, %v56_v16  ;;  %v127_v41 = vpop.xlane.xlu1 %126 }
  0xad   :  { %v147_v43 = vrot.slane %v127_v41, 1  ;;  %v124_v46 = vpop.xlane.xlu0 %123 }
  0xae   :  { %v146_v37 = vrot.slane %v124_v46, 1 }
  0xaf   :  { %v163_v48 = vadd.f32 %v147_v43, %v65_v23 }
  0xb0   :  { %v162_v49 = vadd.f32 %v146_v37, %v62_v24  ;;  %v133_v45 = vpop.xlane.xlu1 %132 }
  0xb1   :  { %v149_v50 = vrot.slane %v133_v45, 1  ;;  %v130_v26 = vpop.xlane.xlu0 %129 }
  0xb2   :  { %v148_v51 = vrot.slane %v130_v26, 1 }
  0xb3   :  { %v165_v52 = vadd.f32 %v149_v50, %v71_v47 }
  0xb4   :  { %v164_v44 = vadd.f32 %v148_v51, %v68_v25  ;;  %v201_v54 = vpop.xlane.xlu1 %200 }
  0xb5   :  { %v229_v55 = vrot.slane %v201_v54, 2  ;;  %v198_v56 = vpop.xlane.xlu0 %197 }
  0xb6   :  { %v228_v58 = vrot.slane %v198_v56, 2 }
  0xb7   :  { %v245_v60 = vadd.f32 %v229_v55, %v159_v59 }
  0xb8   :  { %v213_v17 = vpop.xlane.xlu1 %212  ;;  %v244_v28 = vadd.f32 %v228_v58, %v158_v32 }
  0xb9   :  { %v233_v21 = vrot.slane %v213_v17, 2  ;;  %v210_v57 = vpop.xlane.xlu0 %209 }
  0xba   :  { %v232_v61 = vrot.slane %v210_v57, 2 }
  0xbb   :  { %v249_v62 = vadd.f32 %v233_v21, %v163_v48 }
  0xbc   :  { %v216_v63 = vpop.xlane.xlu1 %215  ;;  %v248_v0 = vadd.f32 %v232_v61, %v162_v49 }
  0xbd   :  { %v234_v1 = vrot.slane %v216_v63, 2  ;;  %v204_v2 = vpop.xlane.xlu0 %203 }
  0xbe   :  { %v230_v53 = vrot.slane %v204_v2, 2 }
  0xbf   :  { %v250_v3 = vadd.f32 %v234_v1, %v164_v44 }
  0xc0   :  { %v219_v36 = vpop.xlane.xlu1 %218  ;;  %v246_v42 = vadd.f32 %v230_v53, %v160_v40 }
  0xc1   :  { %v235_v4 = vrot.slane %v219_v36, 2  ;;  %v207_v5 = vpop.xlane.xlu0 %206 }
  0xc2   :  { %v231_v6 = vrot.slane %v207_v5, 2 }
  0xc3   :  { %v251_v7 = vadd.f32 %v235_v4, %v165_v52 }
  0xc4   :  { %v287_v8 = vpop.xlane.xlu1 %286  ;;  %v247_v9 = vadd.f32 %v231_v6, %v161_v39 }
  0xc5   :  { %v307_v10 = vadd.f32 %v287_v8, %v245_v60  ;;  %v284_v11 = vpop.xlane.xlu0 %283 }
  0xc6   :  { %v306_v12 = vadd.f32 %v284_v11, %v244_v28 }
  0xc8   :  { %v299_v13 = vpop.xlane.xlu1 %298 }
  0xc9   :  { %v311_v14 = vadd.f32 %v299_v13, %v249_v62  ;;  %v296_v15 = vpop.xlane.xlu0 %295 }
  0xca   :  { %v310_v16 = vadd.f32 %v296_v15, %v248_v0 }
  0xcc   :  { %v348_v18 = vpop.xlane.xlu1 %347 }
  0xcd   :  { %v376_v19 = vrot.slane %v348_v18, 1  ;;  %v345_v20 = vpop.xlane.xlu0 %344 }
  0xce   :  { %v375_v22 = vrot.slane %v345_v20, 1 }
  0xcf   :  { %v392_v23 = vadd.f32 %v376_v19, %v307_v10 }
  0xd0   :  { %v391_v24 = vadd.f32 %v375_v22, %v306_v12  ;;  %v360_v47 = vpop.xlane.xlu1 %359 }
  0xd1   :  { %v380_v25 = vrot.slane %v360_v47, 1  ;;  %v357_v27 = vpop.xlane.xlu0 %356 }
  0xd2   :  { %v379_v29 = vrot.slane %v357_v27, 1 }
  0xd3   :  { %v3112_v30 = vadd.f32 %v380_v25, %v311_v14 }
  0xd4   :  { %v395_v31 = vadd.f32 %v379_v29, %v310_v16  ;;  %v302_v59 = vpop.xlane.xlu1 %301 }
  0xd5   :  { %v312_v32 = vadd.f32 %v302_v59, %v250_v3  ;;  %v290_v33 = vpop.xlane.xlu0 %289 }
  0xd6   :  { %v308_v34 = vadd.f32 %v290_v33, %v246_v42 }
  0xd8   :  { %v363_v35 = vpop.xlane.xlu1 %362 }
  0xd9   :  { %v381_v38 = vrot.slane %v363_v35, 1  ;;  %v351_v39 = vpop.xlane.xlu0 %350 }
  0xda   :  { %v377_v40 = vrot.slane %v351_v39, 1 }
  0xdb   :  { %v3114_v41 = vadd.f32 %v381_v38, %v312_v32 }
  0xdc   :  { %v3116_v43 = vadd.f32 %v377_v40, %v308_v34  ;;  %v305_v46 = vpop.xlane.xlu1 %304 }
  0xdd   :  { %v313_v37 = vadd.f32 %v305_v46, %v251_v7  ;;  %v293_v48 = vpop.xlane.xlu0 %292 }
  0xde   :  { %v309_v49 = vadd.f32 %v293_v48, %v247_v9 }
  0xe0   :  { %v366_v45 = vpop.xlane.xlu1 %365 }
  0xe1   :  { %v382_v50 = vrot.slane %v366_v45, 1  ;;  %v354_v26 = vpop.xlane.xlu0 %353 }
  0xe2   :  { %v378_v51 = vrot.slane %v354_v26, 1 }
  0xe3   :  { %v3118_v52 = vadd.f32 %v382_v50, %v313_v37 }
  0xe4   :  { %v3120_v44 = vadd.f32 %v378_v51, %v309_v49  ;;  %v433_v54 = vpop.xlane.xlu1 %432 }
  0xe5   :  { %v430_v55 = vpop.xlane.xlu0 %429  ;;  %v461_v6 = vrot.slane %v433_v54, 2 }
  0xe6   :  { %v460_v8 = vrot.slane %v430_v55, 2 }
  0xe7   :  { %v477_v10 = vadd.f32 %v461_v6, %v392_v23 }
  0xe8   :  { %v445_v56 = vpop.xlane.xlu1 %444  ;;  %v476_v14 = vadd.f32 %v460_v8, %v391_v24 }
  0xe9   :  { %v442_v58 = vpop.xlane.xlu0 %441  ;;  %v465_v20 = vrot.slane %v445_v56, 2 }
  0xea   :  { %v464_v13 = vrot.slane %v442_v58, 2 }
  0xeb   :  { %v481_v23 = vadd.f32 %v465_v20, %v3112_v30 }
  0xec   :  { %v3122_v60 = vpop.xlane.xlu1 %447  ;;  %v480_v27 = vadd.f32 %v464_v13, %v395_v31 }
  0xed   :  { %v436_v17 = vpop.xlane.xlu0 %435  ;;  %v466_v50 = vrot.slane %v3122_v60, 2 }
  0xee   :  { %v462_v24 = vrot.slane %v436_v17, 2 }
  0xf0   :  { %v3124_v28 = vpop.xlane.xlu1 %450  ;;  %v478_v51 = vadd.f32 %v462_v24, %v3116_v43 }
  0xf1   :  { %v3126_v21 = vpop.xlane.xlu0 %438 }
  0xf2   :  { %v463_v17 = vrot.slane %v3126_v21, 2 }
  0xf4   :  { %v519_v57 = vpop.xlane.xlu1 %518 }
  0xf5   :  { %v516_v61 = vpop.xlane.xlu0 %515  ;;  %v539_v16 = vadd.f32 %v519_v57, %v477_v10  ;;  %v482_v57 = vadd.f32 %v466_v50, %v3114_v41 }
  0xf6   :  { %v538_v18 = vadd.f32 %v516_v61, %v476_v14 }
  0xf8   :  { %v531_v62 = vpop.xlane.xlu1 %530 }
  0xf9   :  { %v528_v63 = vpop.xlane.xlu0 %527  ;;  %v543_v48 = vadd.f32 %v531_v62, %v481_v23 }
  0xfa   :  { %v542_v34 = vadd.f32 %v528_v63, %v480_v27 }
  0xfc   :  { %v580_v0 = vpop.xlane.xlu1 %579 }
  0xfd   :  { %v577_v1 = vpop.xlane.xlu0 %576  ;;  %v608_v11 = vrot.slane %v580_v0, 1 }
  0xfe   :  { %v607_v15 = vrot.slane %v577_v1, 1 }
  0xff   :  { %v624_v22 = vadd.f32 %v608_v11, %v539_v16 }
 0x100   :  { %v592_v2 = vpop.xlane.xlu1 %591  ;;  %v623_v29 = vadd.f32 %v607_v15, %v538_v18 }
 0x101   :  { %v589_v53 = vpop.xlane.xlu0 %588  ;;  %v612_v40 = vrot.slane %v592_v2, 1  ;;  %v467_v2 = vrot.slane %v3124_v28, 2 }
 0x102   :  { %v611_v59 = vrot.slane %v589_v53, 1  ;;  %v479_v53 = vadd.f32 %v463_v17, %v3120_v44 }
 0x103   :  { %v628_v26 = vadd.f32 %v612_v40, %v543_v48  ;;  %v483_v41 = vadd.f32 %v467_v2, %v3118_v52 }
 0x104   :  { %v534_v3 = vpop.xlane.xlu1 %533  ;;  %v627_v46 = vadd.f32 %v611_v59, %v542_v34 }
 0x105   :  { %v522_v36 = vpop.xlane.xlu0 %521  ;;  %v544_v63 = vadd.f32 %v534_v3, %v482_v57 }
 0x106   :  { %v540_v30 = vadd.f32 %v522_v36, %v478_v51 }
 0x108   :  { %v595_v42 = vpop.xlane.xlu1 %594 }
 0x109   :  { %v583_v4 = vpop.xlane.xlu0 %582  ;;  %v613_v61 = vrot.slane %v595_v42, 1 }
 0x10a   :  { %v609_v54 = vrot.slane %v583_v4, 1 }
 0x10b   :  { %v629_v43 = vadd.f32 %v613_v61, %v544_v63 }
 0x10c   :  { %v3128_v5 = vpop.xlane.xlu1 %536  ;;  %v625_v62 = vadd.f32 %v609_v54, %v540_v30 }
 0x10d   :  { %v525_v7 = vpop.xlane.xlu0 %524  ;;  %v545_v3 = vadd.f32 %v3128_v5, %v483_v41 }
 0x10e   :  { %v541_v4 = vadd.f32 %v525_v7, %v479_v53 }
 0x110   :  { %v3130_v9 = vpop.xlane.xlu1 %597 }
 0x111   :  { %v586_v12 = vpop.xlane.xlu0 %585  ;;  %v614_v42 = vrot.slane %v3130_v9, 1 }
 0x112   :  { %v610_v36 = vrot.slane %v586_v12, 1 }
 0x113   :  { %v630_v28 = vadd.f32 %v614_v42, %v545_v3 }
 0x114   :  { %v665_v19 = vpop.xlane.xlu1 %664  ;;  %v626_v10 = vadd.f32 %v610_v36, %v541_v4 }
 0x115   :  { %v693_v47 = vrot.slane %v665_v19, 2  ;;  %v662_v25 = vpop.xlane.xlu0 %661 }
 0x116   :  { %v692_v32 = vrot.slane %v662_v25, 2 }
 0x117   :  { %v709_v33 = vadd.f32 %v693_v47, %v624_v22 }
 0x118   :  { %v708_v35 = vadd.f32 %v692_v32, %v623_v29  ;;  %v677_v38 = vpop.xlane.xlu1 %676 }
 0x119   :  { %v674_v39 = vpop.xlane.xlu0 %673  ;;  %728 = vperm.xlu1 %2443, %v709_v33   ;;  %v697_v49 = vrot.slane %v677_v38, 2 }
 0x11a   :  { %v696_v37 = vrot.slane %v674_v39, 2  ;;  %725 = vperm.xlu0 %2442, %v708_v35  }
 0x11b   :  { %v713_v55 = vadd.f32 %v697_v49, %v628_v26 }
 0x11c   :  { %v712_v45 = vadd.f32 %v696_v37, %v627_v46  ;;  %v680_v58 = vpop.xlane.xlu1 %679 }
 0x11d   :  { %v668_v31 = vpop.xlane.xlu0 %667  ;;  %v698_v0 = vrot.slane %v680_v58, 2 }
 0x11e   :  { %737 = vperm.xlu1 %2443, %v712_v45   ;;  %v694_v56 = vrot.slane %v668_v31, 2 }
 0x11f   :  { %v714_v6 = vadd.f32 %v698_v0, %v629_v43 }
 0x120   :  { %v710_v1 = vadd.f32 %v694_v56, %v625_v62  ;;  %v683_v21 = vpop.xlane.xlu1 %682 }
 0x121   :  { %v671_v60 = vpop.xlane.xlu0 %670  ;;  %v699_v11 = vrot.slane %v683_v21, 2 }
 0x122   :  { %740 = vperm.xlu1 %2443, %v713_v55   ;;  %v695_v8 = vrot.slane %v671_v60, 2 }
 0x123   :  { %v715_v14 = vadd.f32 %v699_v11, %v630_v28 }
 0x124   :  { %v711_v13 = vadd.f32 %v695_v8, %v626_v10 }
 0x126   :  { %731 = vperm.xlu1 %2443, %v710_v1  }
 0x12a   :  { %743 = vperm.xlu1 %2443, %v714_v6  }
 0x12e   :  { %734 = vperm.xlu1 %2443, %v711_v13  }
 0x132   :  { %746 = vperm.xlu1 %2443, %v715_v14  }
 0x139   :  { %v1423_v44 = vpop.f32.mrb[0].mxu1 }
 0x13a   :  { %v2057_v7 = vpop.f32.mrb[0].mxu0  ;;  %v2300_v12 = vpop.f32.mrb[1].mxu1 }
 0x13b   :  { %v2405_v15 = vadd.f32 %v2057_v7, %v1423_v44  ;;  %v2356_v52 = vpop.f32.mrb[1].mxu0 }
 0x13d   :  { %2063 = vst.msk [vmem:[#allocation4] sm:$0x3] %vm2062_vm6, %v2405_v15 }
 0x13e   :  { %2455 = shalt.err (!%p2452_p4)
}
 0x13f   :  { %s2456_s8 = scalar_lea.hbm %s3176_s4, 32 }
 0x140   :  { %p2457_p5 = scmp.ne.s32.totalorder %s3176_s4, %s2456_s8  ;;  %p2460_p6 = scmp.lt.u32.totalorder %s2456_s8, %s3176_s4 }
 0x142   :  { %p2462_p7 = pnand %p2460_p6, %p2457_p5 }
 0x144   :  { %2465 = shalt.err (!%p2462_p7)
}
 0x145   :  { %2085 = dma.vmem_to_hbm [thread:$0]  %s2083_s30, 32, %s3176_s4, [#allocation5]   ;;  %v748_v16 = vlaneseq  ;;  %vm784_vm7 = vcmask 1042434   ;;  %vm786_vm8 = vcmask 1043459   ;;  %vm793_vm9 = vcmask 27648  }
 0x146   :  { %s2497_s4 = smov [#allocation2]  }
 0x147   :  { %v749_v19 = vand.u32 127, %v748_v16  ;;  %v751_v20 = vshrl.u32 %v748_v16, 7  ;;  %s2069_s14 = sshll.u32 %s2497_s4, 4  ;;  %s2070_s14 = int_to_ptr.vmem [resolvable:$true] %s2069_s14 }
 0x148   :  { %s2466_s15 = scalar_lea.vmem %s2070_s14, 128  ;;  %p2471_p9 = scmp.lt.s32.totalorder %s2070_s14, %s2070_s14 }
 0x149   :  { %v752_v47 = vsub.s32 %v749_v19, %v751_v20  ;;  %p2467_p8 = scmp.ne.s32.totalorder %s2070_s14, %s2466_s15  ;;  %p2472_p10 = scmp.lt.s32.totalorder %s2466_s15, %s2466_s15 }
 0x14b   :  { %p2473_p11 = por %p2472_p10, %p2471_p9 }
 0x14d   :  { %p2474_p12 = pnand %p2473_p11, %p2467_p8 }
 0x198   :  { %v729_v5 = vpop.permute.xlu1 %728 }
 0x199   :  { %v726_v25 = vpop.permute.xlu0 %725  ;;  %v757_v29 = vrot.slane %v729_v5, %v752_v47 }
 0x19a   :  { %v753_v59 = vrot.slane %v726_v25, %v752_v47 }
 0x19c   :  { %v783_v34 = vsel %vm782_vm3, %v757_v29, %v753_v59 }
 0x19d   :  { %v738_v9 = vpop.permute.xlu1 %737 }
 0x19e   :  { %v769_v24 = vrot.slane %v738_v9, %v752_v47 }
 0x1a1   :  { %v741_v18 = vpop.permute.xlu1 %740 }
 0x1a2   :  { %v773_v35 = vrot.slane %v741_v18, %v752_v47 }
 0x1a4   :  { %v788_v37 = vsel %vm782_vm3, %v773_v35, %v769_v24 }
 0x1a5   :  { %v732_v22 = vpop.permute.xlu1 %731 }
 0x1a6   :  { %v761_v32 = vrot.slane %v732_v22, %v752_v47 }
 0x1a8   :  { %v785_v38 = vsel %vm784_vm7, %v761_v32, %v783_v34 }
 0x1a9   :  { %v744_v27 = vpop.permute.xlu1 %743 }
 0x1aa   :  { %v777_v39 = vrot.slane %v744_v27, %v752_v47 }
 0x1ac   :  { %v789_v49 = vsel %vm784_vm7, %v777_v39, %v788_v37 }
 0x1ad   :  { %v735_v33 = vpop.permute.xlu1 %734 }
 0x1ae   :  { %v765_v23 = vrot.slane %v735_v33, %v752_v47 }
 0x1b0   :  { %v787_v40 = vsel %vm786_vm8, %v765_v23, %v785_v38 }
 0x1b1   :  { %v747_v46 = vpop.permute.xlu1 %746  ;;  %794 = vst.msk [vmem:[#allocation2] sm:$0xf] %vm793_vm9, %v787_v40 }
 0x1b2   :  { %v781_v48 = vrot.slane %v747_v46, %v752_v47 }
 0x1b4   :  { %v790_v45 = vsel %vm786_vm8, %v781_v48, %v789_v49 }
 0x1b5   :  { %795 = vst.msk [vmem:[#allocation2 + $0x4] sm:$0xf] %vm793_vm9, %v790_v45 }
 0x1b6   :  { %2477 = shalt.err (!%p2474_p12)
}
 0x1b7   :  { %s2478_s18 = scalar_lea.hbm %s3175_s3, 128 }
 0x1b8   :  { %p2479_p13 = scmp.ne.s32.totalorder %s3175_s3, %s2478_s18  ;;  %p2482_p0 = scmp.lt.u32.totalorder %s2478_s18, %s3175_s3 }
 0x1ba   :  { %p2484_p1 = pnand %p2482_p0, %p2479_p13 }
 0x1bc   :  { %2487 = shalt.err (!%p2484_p1)
}
 0x1bd   :  { %s2498_s1 = smov 64   ;;  %s2499_s23 = smov 4  }
 0x1be   :  { %2075 = dma.vmem_to_hbm [thread:$0]  %s2070_s14, 128, %s3175_s3, [#allocation3], %s2498_s1, %s2498_s1, %s2499_s23  }
 0x1bf   :  { %2488 = dma.done.wait [#allocation3], 128  }
 0x1c0   :  { %2489 = vsyncadd [#allocation3], 4294967168 }
 0x1c1   :  { %2490 = dma.done.wait [#allocation5], 32  }
 0x1c2   :  { %2491 = vsyncadd [#allocation5], 4294967264 }
 0x1c3   :  { %2092 = vsyncpa [#allocation3], 1 }
 0x1c4   :  { %2093 = vsyncpa [#allocation5], 1 }

</bundles_post_ra>
